<compile_context>
chip_gen: v6e
topology: v6e:2x2x1
jax: 0.10.0
libtpu: 0.0.40
codegen_flags: <defaults>
</compile_context>

<pallas_src>
import functools

import jax
import jax.numpy as jnp
from jax import lax
from jax.experimental import pallas as pl
from jax.experimental.pallas import tpu as pltpu


def attention_kernel(out_ref, ctx_ref, wmixT_ref, wdecT_ref, b_ref,
                     attended_ref, attn_ref,
                     m_scr, l_scr, acc_scr, *, mm_dtype, ctx_tile, num_ctx_tiles):
    """One grid step = (batch b, query-tile q, context-tile k); k is innermost.

    out_ref      (tq, D)   decoder rows for (b, q)                [resident across k]
    ctx_ref      (tk, D)   encoder rows for context tile k
    wmixT_ref    (D, D)    linear_out.weight[:, :D].T             [constant]
    wdecT_ref    (D, D)    linear_out.weight[:, D:].T             [constant]
    b_ref        (1, D)    linear_out.bias (f32)                  [constant]
    attended_ref (tq, D)   tanh(...) output                       [resident across k]
    attn_ref     (tq, Li)  attention weights; raw scores are staged here per k step
                           (only when Li is tiled) and normalised on the last k step
    m_scr/l_scr  (tq, 1)   online-softmax running max / denominator (f32)
    acc_scr      (tq, D)   online-softmax numerator accumulator (f32)
    """
    k = pl.program_id(2)

    @pl.when(k == 0)
    def _init():
        m_scr[...] = jnp.full(m_scr.shape, -jnp.inf, m_scr.dtype)
        l_scr[...] = jnp.zeros(l_scr.shape, l_scr.dtype)
        acc_scr[...] = jnp.zeros(acc_scr.shape, acc_scr.dtype)

    o = out_ref[...]                                      # (tq, D)  matmul dtype
    c = ctx_ref[...]                                      # (tk, D)  matmul dtype

    # scores = o @ c^T  (NT dot_general -> no transpose relayout; f32 accumulate)
    s = lax.dot_general(o, c, (((1,), (1,)), ((), ())),
                        preferred_element_type=jnp.float32)       # (tq, tk) f32

    if num_ctx_tiles > 1:
        # Stage raw scores into the resident attn output block; normalised at the end.
        col = pl.multiple_of(k * ctx_tile, ctx_tile)
        attn_ref[:, pl.ds(col, ctx_tile)] = s.astype(attn_ref.dtype)

    # ---- online softmax update (f32 on VPU/EUP) ----
    m_prev = m_scr[...]
    m_new = jnp.maximum(m_prev, jnp.max(s, axis=-1, keepdims=True))
    alpha = jnp.exp(m_prev - m_new)                       # rescale for old partials
    p = jnp.exp(s - m_new)                                # (tq, tk) f32
    l_scr[...] = alpha * l_scr[...] + jnp.sum(p, axis=-1, keepdims=True)
    acc_scr[...] = alpha * acc_scr[...] + jnp.dot(
        p.astype(mm_dtype), c, preferred_element_type=jnp.float32)
    m_scr[...] = m_new

    @pl.when(k == num_ctx_tiles - 1)
    def _finalize():
        # Exact reciprocal (attention rows sum to 1; approx path was a correctness concern).
        inv_den = pl.reciprocal(l_scr[...], approx=False)         # (tq, 1)

        # attn = softmax(scores): normalise the full-row scores.
        if num_ctx_tiles == 1:
            s_full = s                                            # still live, exact
        else:
            s_full = attn_ref[...].astype(jnp.float32)            # staged scores
        attn_ref[...] = (jnp.exp(s_full - m_scr[...]) * inv_den).astype(attn_ref.dtype)

        # attended = tanh([mix, output] @ W^T + b) with W split/transposed on the host:
        #   combined @ W^T == mix @ W[:, :D]^T + output @ W[:, D:]^T
        mix = acc_scr[...] * inv_den                              # (tq, D) f32
        y = (jnp.dot(mix.astype(mm_dtype), wmixT_ref[...],
                     preferred_element_type=jnp.float32)
             + jnp.dot(o, wdecT_ref[...],
                       preferred_element_type=jnp.float32)
             + b_ref[...].astype(jnp.float32))
        attended_ref[...] = jnp.tanh(y).astype(attended_ref.dtype)


def _pick_query_tile(lo, preferred):
    if lo <= preferred:
        return lo            # single block == full dim, always satisfies (8,128) rule
    return preferred         # grid uses cdiv; ragged tail rows are clipped on writeback


def _pick_ctx_tile(li, requested):
    if requested is not None:
        if li % requested != 0:
            raise ValueError("ctx_tile must evenly divide input_len")
        return requested
    if li <= 1024:
        return li
    for tk in (1024, 512, 256, 128):
        if li % tk == 0:
            return tk
    # TODO(synk): input_len > 1024 that is not a multiple of 128 falls back to a single
    # full-length context block (correct, but higher VMEM use than the tiled path).
    return li


def attention_forward(output, context, w_out, b_out, *,
                      matmul_dtype=None, attn_dtype=None,
                      query_tile=256, ctx_tile=None,
                      single_buffer_weights=True):
    """output: (B, Lo, D), context: (B, Li, D), w_out: (D, 2D), b_out: (D,).

    matmul_dtype: dtype of MXU operands (accumulation is always f32).  None -> input
      dtype (exact vs. an f32 reference); jnp.bfloat16 -> MXU fast path + halved DMA.
    attn_dtype:   dtype of the returned attention matrix (None -> input dtype); bf16
      halves the dominant B*Lo*Li HBM writeback when callers tolerate it.
    query_tile:   256 fills the v6e/v7x 256-wide MXU; use 128 on v5e.
    ctx_tile:     context (Li) tile for the online-softmax axis (None -> auto).
    """
    B, Lo, D = output.shape
    Bc, Li, Dc = context.shape
    assert (Bc, Dc) == (B, D)
    assert w_out.shape == (D, 2 * D) and b_out.shape == (D,)

    out_dtype = output.dtype
    attn_out_dtype = out_dtype if attn_dtype is None else jnp.dtype(attn_dtype)
    mm_dtype = out_dtype if matmul_dtype is None else jnp.dtype(matmul_dtype)

    tq = _pick_query_tile(Lo, query_tile)
    tk = _pick_ctx_tile(Li, ctx_tile)
    n_qt = pl.cdiv(Lo, tq)
    n_kt = Li // tk

    # Cast matmul operands ONCE in the wrapper (halves HBM->VMEM DMA bytes and every
    # double-buffered VMEM block when bf16); softmax/bias/tanh stay in f32.
    output_mm = output.astype(mm_dtype)
    context_mm = context.astype(mm_dtype)
    # Split + transpose the projection weight once on the host (no in-kernel slice/.T).
    w_mix_T = jnp.asarray(w_out[:, :D].T, dtype=mm_dtype)    # (D, D)
    w_dec_T = jnp.asarray(w_out[:, D:].T, dtype=mm_dtype)    # (D, D)
    b2d = b_out.reshape(1, D).astype(jnp.float32)

    kernel = functools.partial(attention_kernel, mm_dtype=mm_dtype,
                               ctx_tile=tk, num_ctx_tiles=n_kt)

    def run(single_buffer):
        # Constant blocks (index_map always (0,0)) don't need double-buffering.
        const_kw = {"pipeline_mode": pl.Buffered(1)} if single_buffer else {}
        grid_spec = pltpu.PrefetchScalarGridSpec(
            num_scalar_prefetch=0,
            grid=(B, n_qt, n_kt),                       # b outer, q middle, k innermost
            in_specs=[
                pl.BlockSpec((None, tq, D), lambda b, q, k: (b, q, 0)),
                pl.BlockSpec((None, tk, D), lambda b, q, k: (b, k, 0)),
                pl.BlockSpec((D, D), lambda b, q, k: (0, 0), **const_kw),
                pl.BlockSpec((D, D), lambda b, q, k: (0, 0), **const_kw),
                pl.BlockSpec((1, D), lambda b, q, k: (0, 0), **const_kw),
            ],
            out_specs=[
                pl.BlockSpec((None, tq, D), lambda b, q, k: (b, q, 0)),
                pl.BlockSpec((None, tq, Li), lambda b, q, k: (b, q, 0)),
            ],
            scratch_shapes=[
                pltpu.VMEM((tq, 1), jnp.float32),       # running max
                pltpu.VMEM((tq, 1), jnp.float32),       # running denominator
                pltpu.VMEM((tq, D), jnp.float32),       # numerator accumulator
            ],
        )
        return pl.pallas_call(
            kernel,
            out_shape=(jax.ShapeDtypeStruct((B, Lo, D), out_dtype),
                       jax.ShapeDtypeStruct((B, Lo, Li), attn_out_dtype)),
            grid_spec=grid_spec,
            compiler_params=pltpu.CompilerParams(
                dimension_semantics=("parallel", "parallel", "arbitrary"),
                vmem_limit_bytes=40 * 1024 * 1024,      # safe on v7x (64 MiB physical)
            ),
        )(output_mm, context_mm, w_mix_T, w_dec_T, b2d)

    if single_buffer_weights:
        try:
            return run(True)
        except Exception:
            pass   # Buffered(1) not supported by this Pallas build -> default buffering
    return run(False)


def attention_reference(output, context, w_out, b_out):
    """Pure-JAX reference matching the PyTorch forward (dot attention, no mask)."""
    scores = jnp.einsum('bod,bid->boi', output, context)
    attn = jax.nn.softmax(scores, axis=-1)
    mix = jnp.einsum('boi,bid->bod', attn, context)
    combined = jnp.concatenate([mix, output], axis=-1)
    out = jnp.tanh(combined @ w_out.T + b_out)
    return out, attn


if __name__ == "__main__":
    def make_inputs(B, Lo, Li, D, key):
        k_out, k_ctx, k_w, k_b = jax.random.split(key, 4)
        output = jax.random.normal(k_out, (B, Lo, D), dtype=jnp.float32)
        context = jax.random.normal(k_ctx, (B, Li, D), dtype=jnp.float32)
        # linear_out = nn.Linear(dim * 2, dim): weight (D, 2D), bias (D,)
        bound = 1.0 / jnp.sqrt(2.0 * D)
        w_out = jax.random.uniform(k_w, (D, 2 * D), jnp.float32, -bound, bound)
        b_out = jax.random.uniform(k_b, (D,), jnp.float32, -bound, bound)
        return output, context, w_out, b_out

    # --- test 1: module-default small shapes (dim=32), single-tile path ---
    B, Lo, Li, D = 2, 8, 8, 32
    output, context, w_out, b_out = make_inputs(B, Lo, Li, D, jax.random.PRNGKey(0))
    attended, attn = attention_forward(output, context, w_out, b_out)
    jax.block_until_ready((attended, attn))
    ref_att, ref_attn = attention_reference(output, context, w_out, b_out)
    assert attended.shape == (B, Lo, D) and attn.shape == (B, Lo, Li)
    assert jnp.allclose(attended, ref_att, atol=3e-5, rtol=3e-5)
    assert jnp.allclose(attn, ref_attn, atol=3e-5, rtol=3e-5)

    # --- test 2: tiled path (ragged query tiling + online softmax over 2 ctx tiles) ---
    B2, Lo2, Li2, D2 = 2, 20, 256, 32
    output2, context2, w_out2, b_out2 = make_inputs(B2, Lo2, Li2, D2, jax.random.PRNGKey(1))
    attended2, attn2 = attention_forward(output2, context2, w_out2, b_out2,
                                         query_tile=8, ctx_tile=128)
    jax.block_until_ready((attended2, attn2))
    ref_att2, ref_attn2 = attention_reference(output2, context2, w_out2, b_out2)
    assert attended2.shape == (B2, Lo2, D2) and attn2.shape == (B2, Lo2, Li2)
    assert jnp.allclose(attended2, ref_att2, atol=3e-5, rtol=3e-5)
    assert jnp.allclose(attn2, ref_attn2, atol=3e-5, rtol=3e-5)

    # --- test 3: bf16 MXU-operand fast path (f32 accumulation, f32 softmax/tanh) ---
    att3, attn3 = attention_forward(output2, context2, w_out2, b_out2,
                                    query_tile=8, ctx_tile=128,
                                    matmul_dtype=jnp.bfloat16)
    jax.block_until_ready((att3, attn3))
    assert bool(jnp.all(jnp.isfinite(att3))) and bool(jnp.all(jnp.isfinite(attn3)))
    assert jnp.allclose(att3, ref_att2, atol=1e-1, rtol=1e-1)
    assert jnp.allclose(attn3, ref_attn2, atol=1e-1, rtol=1e-1)

    print("KERNEL_OK")
</pallas_src>

<mosaic_0001>
module attributes {stable_mosaic.version = 11 : i64} {
  func.func @attention_kernel(%arg0: i32, %arg1: i32, %arg2: i32, %arg3: memref<1x8x32xf32, #tpu.memory_space<vmem>>, %arg4: memref<1x8x32xf32, #tpu.memory_space<vmem>>, %arg5: memref<32x32xf32, #tpu.memory_space<vmem>>, %arg6: memref<32x32xf32, #tpu.memory_space<vmem>>, %arg7: memref<1x32xf32, #tpu.memory_space<vmem>>, %arg8: memref<1x8x32xf32, #tpu.memory_space<vmem>>, %arg9: memref<1x8x8xf32, #tpu.memory_space<vmem>>, %arg10: memref<8x1xf32, #tpu.memory_space<vmem>>, %arg11: memref<8x1xf32, #tpu.memory_space<vmem>>, %arg12: memref<8x32xf32, #tpu.memory_space<vmem>>) attributes {dimension_semantics = [#tpu.dimension_semantics<parallel>, #tpu.dimension_semantics<parallel>, #tpu.dimension_semantics<arbitrary>], iteration_bounds = array<i64: 2, 1, 1>, scalar_prefetch = 0 : i64, scratch_operands = 3 : i64, tpu.core_type = #tpu.core_type<tc>, window_params = [{transform_indices = @transform_0, window_bounds = array<i64: 1, 8, 32>}, {transform_indices = @transform_1, window_bounds = array<i64: 1, 8, 32>}, {pipeline_mode = #tpu.pipeline_mode<synchronous>, transform_indices = @transform_2, window_bounds = array<i64: 32, 32>}, {pipeline_mode = #tpu.pipeline_mode<synchronous>, transform_indices = @transform_3, window_bounds = array<i64: 32, 32>}, {pipeline_mode = #tpu.pipeline_mode<synchronous>, transform_indices = @transform_4, window_bounds = array<i64: 1, 32>}, {transform_indices = @transform_5, window_bounds = array<i64: 1, 8, 32>}, {transform_indices = @transform_6, window_bounds = array<i64: 1, 8, 8>}]} {
    %c0_i32 = arith.constant 0 : i32
    %0 = arith.cmpi eq, %arg2, %c0_i32 : i32
    %1 = arith.extui %0 : i1 to i32
    %c0_i32_0 = arith.constant 0 : i32
    %2 = arith.cmpi ne, %1, %c0_i32_0 : i32
    scf.if %2 {
      %cst_23 = arith.constant 0xFF800000 : f32
      %33 = vector.broadcast %cst_23 : f32 to vector<8x1xf32>
      %c0_24 = arith.constant 0 : index
      %c0_25 = arith.constant 0 : index
      %34 = vector.load %arg10[%c0_24, %c0_25] : memref<8x1xf32, #tpu.memory_space<vmem>>, vector<8x1xf32>
      tpu.vector_store %arg10[%c0_24, %c0_25], %33 {strides = array<i32>} : memref<8x1xf32, #tpu.memory_space<vmem>>, vector<8x1xf32>,
      %cst_26 = arith.constant 0.000000e+00 : f32
      %35 = vector.broadcast %cst_26 : f32 to vector<8x1xf32>
      %c0_27 = arith.constant 0 : index
      %c0_28 = arith.constant 0 : index
      %36 = vector.load %arg11[%c0_27, %c0_28] : memref<8x1xf32, #tpu.memory_space<vmem>>, vector<8x1xf32>
      tpu.vector_store %arg11[%c0_27, %c0_28], %35 {strides = array<i32>} : memref<8x1xf32, #tpu.memory_space<vmem>>, vector<8x1xf32>,
      %cst_29 = arith.constant 0.000000e+00 : f32
      %37 = vector.broadcast %cst_29 : f32 to vector<8x32xf32>
      %c0_30 = arith.constant 0 : index
      %c0_31 = arith.constant 0 : index
      %38 = vector.load %arg12[%c0_30, %c0_31] : memref<8x32xf32, #tpu.memory_space<vmem>>, vector<8x32xf32>
      tpu.vector_store %arg12[%c0_30, %c0_31], %37 {strides = array<i32>} : memref<8x32xf32, #tpu.memory_space<vmem>>, vector<8x32xf32>,
    } else {
    }
    %c0 = arith.constant 0 : index
    %c0_1 = arith.constant 0 : index
    %c0_2 = arith.constant 0 : index
    %3 = vector.load %arg3[%c0, %c0_1, %c0_2] : memref<1x8x32xf32, #tpu.memory_space<vmem>>, vector<1x8x32xf32>
    %4 = vector.shape_cast %3 : vector<1x8x32xf32> to vector<8x32xf32>
    %c0_3 = arith.constant 0 : index
    %c0_4 = arith.constant 0 : index
    %c0_5 = arith.constant 0 : index
    %5 = vector.load %arg4[%c0_3, %c0_4, %c0_5] : memref<1x8x32xf32, #tpu.memory_space<vmem>>, vector<1x8x32xf32>
    %6 = vector.shape_cast %5 : vector<1x8x32xf32> to vector<8x32xf32>
    %cst = arith.constant dense<0.000000e+00> : vector<8x8xf32>
    %7 = tpu.matmul %4, %6, %cst {dimension_numbers = #tpu.dot_dimension_numbers<[1], [1], [0], [0], [0, 0, 1, 0], [], []>} : vector<8x32xf32>, vector<8x32xf32>, vector<8x8xf32> -> vector<8x8xf32>
    %c0_6 = arith.constant 0 : index
    %c0_7 = arith.constant 0 : index
    %8 = vector.load %arg10[%c0_6, %c0_7] : memref<8x1xf32, #tpu.memory_space<vmem>>, vector<8x1xf32>
    %cst_8 = arith.constant dense<0xFF800000> : vector<8xf32>
    %9 = vector.multi_reduction <maximumf>, %7, %cst_8 [1] : vector<8x8xf32> to vector<8xf32>
    %10 = vector.shape_cast %9 : vector<8xf32> to vector<8x1xf32>
    %11 = arith.maximumf %8, %10 : vector<8x1xf32>
    %12 = arith.subf %8, %11 : vector<8x1xf32>
    %13 = math.exp %12 : vector<8x1xf32>
    %14 = vector.broadcast %11 : vector<8x1xf32> to vector<8x8xf32>
    %15 = arith.subf %7, %14 : vector<8x8xf32>
    %16 = math.exp %15 : vector<8x8xf32>
    %c0_9 = arith.constant 0 : index
    %c0_10 = arith.constant 0 : index
    %17 = vector.load %arg11[%c0_9, %c0_10] : memref<8x1xf32, #tpu.memory_space<vmem>>, vector<8x1xf32>
    %18 = arith.mulf %13, %17 : vector<8x1xf32>
    %cst_11 = arith.constant dense<0.000000e+00> : vector<8xf32>
    %19 = vector.multi_reduction <add>, %16, %cst_11 [1] : vector<8x8xf32> to vector<8xf32>
    %20 = vector.shape_cast %19 : vector<8xf32> to vector<8x1xf32>
    %21 = arith.addf %18, %20 : vector<8x1xf32>
    %c0_12 = arith.constant 0 : index
    %c0_13 = arith.constant 0 : index
    %22 = vector.load %arg11[%c0_12, %c0_13] : memref<8x1xf32, #tpu.memory_space<vmem>>, vector<8x1xf32>
    tpu.vector_store %arg11[%c0_12, %c0_13], %21 {strides = array<i32>} : memref<8x1xf32, #tpu.memory_space<vmem>>, vector<8x1xf32>,
    %c0_14 = arith.constant 0 : index
    %c0_15 = arith.constant 0 : index
    %23 = vector.load %arg12[%c0_14, %c0_15] : memref<8x32xf32, #tpu.memory_space<vmem>>, vector<8x32xf32>
    %24 = vector.broadcast %13 : vector<8x1xf32> to vector<8x32xf32>
    %25 = arith.mulf %24, %23 : vector<8x32xf32>
    %cst_16 = arith.constant dense<0.000000e+00> : vector<8x32xf32>
    %26 = tpu.matmul %16, %6, %cst_16 {dimension_numbers = #tpu.dot_dimension_numbers<[1], [0], [0], [1], [0, 0, 1, 1], [], []>} : vector<8x8xf32>, vector<8x32xf32>, vector<8x32xf32> -> vector<8x32xf32>
    %27 = arith.addf %25, %26 : vector<8x32xf32>
    %c0_17 = arith.constant 0 : index
    %c0_18 = arith.constant 0 : index
    %28 = vector.load %arg12[%c0_17, %c0_18] : memref<8x32xf32, #tpu.memory_space<vmem>>, vector<8x32xf32>
    tpu.vector_store %arg12[%c0_17, %c0_18], %27 {strides = array<i32>} : memref<8x32xf32, #tpu.memory_space<vmem>>, vector<8x32xf32>,
    %c0_19 = arith.constant 0 : index
    %c0_20 = arith.constant 0 : index
    %29 = vector.load %arg10[%c0_19, %c0_20] : memref<8x1xf32, #tpu.memory_space<vmem>>, vector<8x1xf32>
    tpu.vector_store %arg10[%c0_19, %c0_20], %11 {strides = array<i32>} : memref<8x1xf32, #tpu.memory_space<vmem>>, vector<8x1xf32>,
    %c0_i32_21 = arith.constant 0 : i32
    %30 = arith.cmpi eq, %arg2, %c0_i32_21 : i32
    %31 = arith.extui %30 : i1 to i32
    %c0_i32_22 = arith.constant 0 : i32
    %32 = arith.cmpi ne, %31, %c0_i32_22 : i32
    scf.if %32 {
      %c0_23 = arith.constant 0 : index
      %c0_24 = arith.constant 0 : index
      %33 = vector.load %arg11[%c0_23, %c0_24] : memref<8x1xf32, #tpu.memory_space<vmem>>, vector<8x1xf32>
      %34 = tpu.reciprocal %33 : vector<8x1xf32> -> vector<8x1xf32>
      %c0_25 = arith.constant 0 : index
      %c0_26 = arith.constant 0 : index
      %35 = vector.load %arg10[%c0_25, %c0_26] : memref<8x1xf32, #tpu.memory_space<vmem>>, vector<8x1xf32>
      %36 = vector.broadcast %35 : vector<8x1xf32> to vector<8x8xf32>
      %37 = arith.subf %7, %36 : vector<8x8xf32>
      %38 = math.exp %37 : vector<8x8xf32>
      %39 = vector.broadcast %34 : vector<8x1xf32> to vector<8x8xf32>
      %40 = arith.mulf %38, %39 : vector<8x8xf32>
      %c0_27 = arith.constant 0 : index
      %c0_28 = arith.constant 0 : index
      %c0_29 = arith.constant 0 : index
      %41 = vector.load %arg9[%c0_27, %c0_28, %c0_29] : memref<1x8x8xf32, #tpu.memory_space<vmem>>, vector<1x8x8xf32>
      %42 = vector.shape_cast %41 : vector<1x8x8xf32> to vector<8x8xf32>
      %43 = vector.shape_cast %40 : vector<8x8xf32> to vector<1x8x8xf32>
      tpu.vector_store %arg9[%c0_27, %c0_28, %c0_29], %43 {strides = array<i32>} : memref<1x8x8xf32, #tpu.memory_space<vmem>>, vector<1x8x8xf32>,
      %c0_30 = arith.constant 0 : index
      %c0_31 = arith.constant 0 : index
      %44 = vector.load %arg12[%c0_30, %c0_31] : memref<8x32xf32, #tpu.memory_space<vmem>>, vector<8x32xf32>
      %45 = vector.broadcast %34 : vector<8x1xf32> to vector<8x32xf32>
      %46 = arith.mulf %44, %45 : vector<8x32xf32>
      %c0_32 = arith.constant 0 : index
      %c0_33 = arith.constant 0 : index
      %47 = vector.load %arg5[%c0_32, %c0_33] : memref<32x32xf32, #tpu.memory_space<vmem>>, vector<32x32xf32>
      %cst_34 = arith.constant dense<0.000000e+00> : vector<8x32xf32>
      %48 = tpu.matmul %46, %47, %cst_34 {dimension_numbers = #tpu.dot_dimension_numbers<[1], [0], [0], [1], [0, 0, 1, 1], [], []>} : vector<8x32xf32>, vector<32x32xf32>, vector<8x32xf32> -> vector<8x32xf32>
      %c0_35 = arith.constant 0 : index
      %c0_36 = arith.constant 0 : index
      %49 = vector.load %arg6[%c0_35, %c0_36] : memref<32x32xf32, #tpu.memory_space<vmem>>, vector<32x32xf32>
      %cst_37 = arith.constant dense<0.000000e+00> : vector<8x32xf32>
      %50 = tpu.matmul %4, %49, %cst_37 {dimension_numbers = #tpu.dot_dimension_numbers<[1], [0], [0], [1], [0, 0, 1, 1], [], []>} : vector<8x32xf32>, vector<32x32xf32>, vector<8x32xf32> -> vector<8x32xf32>
      %51 = arith.addf %48, %50 : vector<8x32xf32>
      %c0_38 = arith.constant 0 : index
      %c0_39 = arith.constant 0 : index
      %52 = vector.load %arg7[%c0_38, %c0_39] : memref<1x32xf32, #tpu.memory_space<vmem>>, vector<1x32xf32>
      %53 = vector.broadcast %52 : vector<1x32xf32> to vector<8x32xf32>
      %54 = arith.addf %51, %53 : vector<8x32xf32>
      %55 = math.tanh %54 : vector<8x32xf32>
      %c0_40 = arith.constant 0 : index
      %c0_41 = arith.constant 0 : index
      %c0_42 = arith.constant 0 : index
      %56 = vector.load %arg8[%c0_40, %c0_41, %c0_42] : memref<1x8x32xf32, #tpu.memory_space<vmem>>, vector<1x8x32xf32>
      %57 = vector.shape_cast %56 : vector<1x8x32xf32> to vector<8x32xf32>
      %58 = vector.shape_cast %55 : vector<8x32xf32> to vector<1x8x32xf32>
      tpu.vector_store %arg8[%c0_40, %c0_41, %c0_42], %58 {strides = array<i32>} : memref<1x8x32xf32, #tpu.memory_space<vmem>>, vector<1x8x32xf32>,
    } else {
    }
    return
  }
  func.func @transform_0(%arg0: i32, %arg1: i32, %arg2: i32) -> (i32, i32, i32) {
    %c0_i32 = arith.constant 0 : i32
    %c0_i32_0 = arith.constant 0 : i32
    return %arg0, %arg1, %c0_i32 : i32, i32, i32
  }
  func.func @transform_1(%arg0: i32, %arg1: i32, %arg2: i32) -> (i32, i32, i32) {
    %c0_i32 = arith.constant 0 : i32
    %c0_i32_0 = arith.constant 0 : i32
    return %arg0, %arg2, %c0_i32 : i32, i32, i32
  }
  func.func @transform_2(%arg0: i32, %arg1: i32, %arg2: i32) -> (i32, i32) {
    %c0_i32 = arith.constant 0 : i32
    %c0_i32_0 = arith.constant 0 : i32
    %c0_i32_1 = arith.constant 0 : i32
    return %c0_i32, %c0_i32_0 : i32, i32
  }
  func.func @transform_3(%arg0: i32, %arg1: i32, %arg2: i32) -> (i32, i32) {
    %c0_i32 = arith.constant 0 : i32
    %c0_i32_0 = arith.constant 0 : i32
    %c0_i32_1 = arith.constant 0 : i32
    return %c0_i32, %c0_i32_0 : i32, i32
  }
  func.func @transform_4(%arg0: i32, %arg1: i32, %arg2: i32) -> (i32, i32) {
    %c0_i32 = arith.constant 0 : i32
    %c0_i32_0 = arith.constant 0 : i32
    %c0_i32_1 = arith.constant 0 : i32
    return %c0_i32, %c0_i32_0 : i32, i32
  }
  func.func @transform_5(%arg0: i32, %arg1: i32, %arg2: i32) -> (i32, i32, i32) {
    %c0_i32 = arith.constant 0 : i32
    %c0_i32_0 = arith.constant 0 : i32
    return %arg0, %arg1, %c0_i32 : i32, i32, i32
  }
  func.func @transform_6(%arg0: i32, %arg1: i32, %arg2: i32) -> (i32, i32, i32) {
    %c0_i32 = arith.constant 0 : i32
    %c0_i32_0 = arith.constant 0 : i32
    return %arg0, %arg1, %c0_i32 : i32, i32, i32
  }
}

module attributes {stable_mosaic.version = 11 : i64} {
  func.func @attention_kernel(%arg0: i32, %arg1: i32, %arg2: i32, %arg3: memref<1x8x32xf32, #tpu.memory_space<vmem>>, %arg4: memref<1x8x32xf32, #tpu.memory_space<vmem>>, %arg5: memref<32x32xf32, #tpu.memory_space<vmem>>, %arg6: memref<32x32xf32, #tpu.memory_space<vmem>>, %arg7: memref<1x32xf32, #tpu.memory_space<vmem>>, %arg8: memref<1x8x32xf32, #tpu.memory_space<vmem>>, %arg9: memref<1x8x8xf32, #tpu.memory_space<vmem>>, %arg10: memref<8x1xf32, #tpu.memory_space<vmem>>, %arg11: memref<8x1xf32, #tpu.memory_space<vmem>>, %arg12: memref<8x32xf32, #tpu.memory_space<vmem>>) attributes {dimension_semantics = [#tpu.dimension_semantics<parallel>, #tpu.dimension_semantics<parallel>, #tpu.dimension_semantics<arbitrary>], iteration_bounds = array<i64: 2, 1, 1>, scalar_prefetch = 0 : i64, scratch_operands = 3 : i64, tpu.core_type = #tpu.core_type<tc>, window_params = [{transform_indices = @transform_0, window_bounds = array<i64: 1, 8, 32>}, {transform_indices = @transform_1, window_bounds = array<i64: 1, 8, 32>}, {pipeline_mode = #tpu.pipeline_mode<synchronous>, transform_indices = @transform_2, window_bounds = array<i64: 32, 32>}, {pipeline_mode = #tpu.pipeline_mode<synchronous>, transform_indices = @transform_3, window_bounds = array<i64: 32, 32>}, {pipeline_mode = #tpu.pipeline_mode<synchronous>, transform_indices = @transform_4, window_bounds = array<i64: 1, 32>}, {transform_indices = @transform_5, window_bounds = array<i64: 1, 8, 32>}, {transform_indices = @transform_6, window_bounds = array<i64: 1, 8, 8>}]} {
    %c0_i32 = arith.constant 0 : i32
    %0 = arith.cmpi eq, %arg2, %c0_i32 : i32
    %1 = arith.extui %0 : i1 to i32
    %c0_i32_0 = arith.constant 0 : i32
    %2 = arith.cmpi ne, %1, %c0_i32_0 : i32
    scf.if %2 {
      %cst_23 = arith.constant 0xFF800000 : f32
      %33 = vector.broadcast %cst_23 : f32 to vector<8x1xf32>
      %c0_24 = arith.constant 0 : index
      %c0_25 = arith.constant 0 : index
      %34 = vector.load %arg10[%c0_24, %c0_25] : memref<8x1xf32, #tpu.memory_space<vmem>>, vector<8x1xf32>
      tpu.vector_store %arg10[%c0_24, %c0_25], %33 {strides = array<i32>} : memref<8x1xf32, #tpu.memory_space<vmem>>, vector<8x1xf32>,
      %cst_26 = arith.constant 0.000000e+00 : f32
      %35 = vector.broadcast %cst_26 : f32 to vector<8x1xf32>
      %c0_27 = arith.constant 0 : index
      %c0_28 = arith.constant 0 : index
      %36 = vector.load %arg11[%c0_27, %c0_28] : memref<8x1xf32, #tpu.memory_space<vmem>>, vector<8x1xf32>
      tpu.vector_store %arg11[%c0_27, %c0_28], %35 {strides = array<i32>} : memref<8x1xf32, #tpu.memory_space<vmem>>, vector<8x1xf32>,
      %cst_29 = arith.constant 0.000000e+00 : f32
      %37 = vector.broadcast %cst_29 : f32 to vector<8x32xf32>
      %c0_30 = arith.constant 0 : index
      %c0_31 = arith.constant 0 : index
      %38 = vector.load %arg12[%c0_30, %c0_31] : memref<8x32xf32, #tpu.memory_space<vmem>>, vector<8x32xf32>
      tpu.vector_store %arg12[%c0_30, %c0_31], %37 {strides = array<i32>} : memref<8x32xf32, #tpu.memory_space<vmem>>, vector<8x32xf32>,
    } else {
    }
    %c0 = arith.constant 0 : index
    %c0_1 = arith.constant 0 : index
    %c0_2 = arith.constant 0 : index
    %3 = vector.load %arg3[%c0, %c0_1, %c0_2] : memref<1x8x32xf32, #tpu.memory_space<vmem>>, vector<1x8x32xf32>
    %4 = vector.shape_cast %3 : vector<1x8x32xf32> to vector<8x32xf32>
    %c0_3 = arith.constant 0 : index
    %c0_4 = arith.constant 0 : index
    %c0_5 = arith.constant 0 : index
    %5 = vector.load %arg4[%c0_3, %c0_4, %c0_5] : memref<1x8x32xf32, #tpu.memory_space<vmem>>, vector<1x8x32xf32>
    %6 = vector.shape_cast %5 : vector<1x8x32xf32> to vector<8x32xf32>
    %cst = arith.constant dense<0.000000e+00> : vector<8x8xf32>
    %7 = tpu.matmul %4, %6, %cst {dimension_numbers = #tpu.dot_dimension_numbers<[1], [1], [0], [0], [0, 0, 1, 0], [], []>} : vector<8x32xf32>, vector<8x32xf32>, vector<8x8xf32> -> vector<8x8xf32>
    %c0_6 = arith.constant 0 : index
    %c0_7 = arith.constant 0 : index
    %8 = vector.load %arg10[%c0_6, %c0_7] : memref<8x1xf32, #tpu.memory_space<vmem>>, vector<8x1xf32>
    %cst_8 = arith.constant dense<0xFF800000> : vector<8xf32>
    %9 = vector.multi_reduction <maximumf>, %7, %cst_8 [1] : vector<8x8xf32> to vector<8xf32>
    %10 = vector.shape_cast %9 : vector<8xf32> to vector<8x1xf32>
    %11 = arith.maximumf %8, %10 : vector<8x1xf32>
    %12 = arith.subf %8, %11 : vector<8x1xf32>
    %13 = math.exp %12 : vector<8x1xf32>
    %14 = vector.broadcast %11 : vector<8x1xf32> to vector<8x8xf32>
    %15 = arith.subf %7, %14 : vector<8x8xf32>
    %16 = math.exp %15 : vector<8x8xf32>
    %c0_9 = arith.constant 0 : index
    %c0_10 = arith.constant 0 : index
    %17 = vector.load %arg11[%c0_9, %c0_10] : memref<8x1xf32, #tpu.memory_space<vmem>>, vector<8x1xf32>
    %18 = arith.mulf %13, %17 : vector<8x1xf32>
    %cst_11 = arith.constant dense<0.000000e+00> : vector<8xf32>
    %19 = vector.multi_reduction <add>, %16, %cst_11 [1] : vector<8x8xf32> to vector<8xf32>
    %20 = vector.shape_cast %19 : vector<8xf32> to vector<8x1xf32>
    %21 = arith.addf %18, %20 : vector<8x1xf32>
    %c0_12 = arith.constant 0 : index
    %c0_13 = arith.constant 0 : index
    %22 = vector.load %arg11[%c0_12, %c0_13] : memref<8x1xf32, #tpu.memory_space<vmem>>, vector<8x1xf32>
    tpu.vector_store %arg11[%c0_12, %c0_13], %21 {strides = array<i32>} : memref<8x1xf32, #tpu.memory_space<vmem>>, vector<8x1xf32>,
    %c0_14 = arith.constant 0 : index
    %c0_15 = arith.constant 0 : index
    %23 = vector.load %arg12[%c0_14, %c0_15] : memref<8x32xf32, #tpu.memory_space<vmem>>, vector<8x32xf32>
    %24 = vector.broadcast %13 : vector<8x1xf32> to vector<8x32xf32>
    %25 = arith.mulf %24, %23 : vector<8x32xf32>
    %cst_16 = arith.constant dense<0.000000e+00> : vector<8x32xf32>
    %26 = tpu.matmul %16, %6, %cst_16 {dimension_numbers = #tpu.dot_dimension_numbers<[1], [0], [0], [1], [0, 0, 1, 1], [], []>} : vector<8x8xf32>, vector<8x32xf32>, vector<8x32xf32> -> vector<8x32xf32>
    %27 = arith.addf %25, %26 : vector<8x32xf32>
    %c0_17 = arith.constant 0 : index
    %c0_18 = arith.constant 0 : index
    %28 = vector.load %arg12[%c0_17, %c0_18] : memref<8x32xf32, #tpu.memory_space<vmem>>, vector<8x32xf32>
    tpu.vector_store %arg12[%c0_17, %c0_18], %27 {strides = array<i32>} : memref<8x32xf32, #tpu.memory_space<vmem>>, vector<8x32xf32>,
    %c0_19 = arith.constant 0 : index
    %c0_20 = arith.constant 0 : index
    %29 = vector.load %arg10[%c0_19, %c0_20] : memref<8x1xf32, #tpu.memory_space<vmem>>, vector<8x1xf32>
    tpu.vector_store %arg10[%c0_19, %c0_20], %11 {strides = array<i32>} : memref<8x1xf32, #tpu.memory_space<vmem>>, vector<8x1xf32>,
    %c0_i32_21 = arith.constant 0 : i32
    %30 = arith.cmpi eq, %arg2, %c0_i32_21 : i32
    %31 = arith.extui %30 : i1 to i32
    %c0_i32_22 = arith.constant 0 : i32
    %32 = arith.cmpi ne, %31, %c0_i32_22 : i32
    scf.if %32 {
      %c0_23 = arith.constant 0 : index
      %c0_24 = arith.constant 0 : index
      %33 = vector.load %arg11[%c0_23, %c0_24] : memref<8x1xf32, #tpu.memory_space<vmem>>, vector<8x1xf32>
      %34 = tpu.reciprocal %33 : vector<8x1xf32> -> vector<8x1xf32>
      %c0_25 = arith.constant 0 : index
      %c0_26 = arith.constant 0 : index
      %35 = vector.load %arg10[%c0_25, %c0_26] : memref<8x1xf32, #tpu.memory_space<vmem>>, vector<8x1xf32>
      %36 = vector.broadcast %35 : vector<8x1xf32> to vector<8x8xf32>
      %37 = arith.subf %7, %36 : vector<8x8xf32>
      %38 = math.exp %37 : vector<8x8xf32>
      %39 = vector.broadcast %34 : vector<8x1xf32> to vector<8x8xf32>
      %40 = arith.mulf %38, %39 : vector<8x8xf32>
      %c0_27 = arith.constant 0 : index
      %c0_28 = arith.constant 0 : index
      %c0_29 = arith.constant 0 : index
      %41 = vector.load %arg9[%c0_27, %c0_28, %c0_29] : memref<1x8x8xf32, #tpu.memory_space<vmem>>, vector<1x8x8xf32>
      %42 = vector.shape_cast %41 : vector<1x8x8xf32> to vector<8x8xf32>
      %43 = vector.shape_cast %40 : vector<8x8xf32> to vector<1x8x8xf32>
      tpu.vector_store %arg9[%c0_27, %c0_28, %c0_29], %43 {strides = array<i32>} : memref<1x8x8xf32, #tpu.memory_space<vmem>>, vector<1x8x8xf32>,
      %c0_30 = arith.constant 0 : index
      %c0_31 = arith.constant 0 : index
      %44 = vector.load %arg12[%c0_30, %c0_31] : memref<8x32xf32, #tpu.memory_space<vmem>>, vector<8x32xf32>
      %45 = vector.broadcast %34 : vector<8x1xf32> to vector<8x32xf32>
      %46 = arith.mulf %44, %45 : vector<8x32xf32>
      %c0_32 = arith.constant 0 : index
      %c0_33 = arith.constant 0 : index
      %47 = vector.load %arg5[%c0_32, %c0_33] : memref<32x32xf32, #tpu.memory_space<vmem>>, vector<32x32xf32>
      %cst_34 = arith.constant dense<0.000000e+00> : vector<8x32xf32>
      %48 = tpu.matmul %46, %47, %cst_34 {dimension_numbers = #tpu.dot_dimension_numbers<[1], [0], [0], [1], [0, 0, 1, 1], [], []>} : vector<8x32xf32>, vector<32x32xf32>, vector<8x32xf32> -> vector<8x32xf32>
      %c0_35 = arith.constant 0 : index
      %c0_36 = arith.constant 0 : index
      %49 = vector.load %arg6[%c0_35, %c0_36] : memref<32x32xf32, #tpu.memory_space<vmem>>, vector<32x32xf32>
      %cst_37 = arith.constant dense<0.000000e+00> : vector<8x32xf32>
      %50 = tpu.matmul %4, %49, %cst_37 {dimension_numbers = #tpu.dot_dimension_numbers<[1], [0], [0], [1], [0, 0, 1, 1], [], []>} : vector<8x32xf32>, vector<32x32xf32>, vector<8x32xf32> -> vector<8x32xf32>
      %51 = arith.addf %48, %50 : vector<8x32xf32>
      %c0_38 = arith.constant 0 : index
      %c0_39 = arith.constant 0 : index
      %52 = vector.load %arg7[%c0_38, %c0_39] : memref<1x32xf32, #tpu.memory_space<vmem>>, vector<1x32xf32>
      %53 = vector.broadcast %52 : vector<1x32xf32> to vector<8x32xf32>
      %54 = arith.addf %51, %53 : vector<8x32xf32>
      %55 = math.tanh %54 : vector<8x32xf32>
      %c0_40 = arith.constant 0 : index
      %c0_41 = arith.constant 0 : index
      %c0_42 = arith.constant 0 : index
      %56 = vector.load %arg8[%c0_40, %c0_41, %c0_42] : memref<1x8x32xf32, #tpu.memory_space<vmem>>, vector<1x8x32xf32>
      %57 = vector.shape_cast %56 : vector<1x8x32xf32> to vector<8x32xf32>
      %58 = vector.shape_cast %55 : vector<8x32xf32> to vector<1x8x32xf32>
      tpu.vector_store %arg8[%c0_40, %c0_41, %c0_42], %58 {strides = array<i32>} : memref<1x8x32xf32, #tpu.memory_space<vmem>>, vector<1x8x32xf32>,
    } else {
    }
    return
  }
  func.func @transform_0(%arg0: i32, %arg1: i32, %arg2: i32) -> (i32, i32, i32) {
    %c0_i32 = arith.constant 0 : i32
    %c0_i32_0 = arith.constant 0 : i32
    return %arg0, %arg1, %c0_i32 : i32, i32, i32
  }
  func.func @transform_1(%arg0: i32, %arg1: i32, %arg2: i32) -> (i32, i32, i32) {
    %c0_i32 = arith.constant 0 : i32
    %c0_i32_0 = arith.constant 0 : i32
    return %arg0, %arg2, %c0_i32 : i32, i32, i32
  }
  func.func @transform_2(%arg0: i32, %arg1: i32, %arg2: i32) -> (i32, i32) {
    %c0_i32 = arith.constant 0 : i32
    %c0_i32_0 = arith.constant 0 : i32
    %c0_i32_1 = arith.constant 0 : i32
    return %c0_i32, %c0_i32_0 : i32, i32
  }
  func.func @transform_3(%arg0: i32, %arg1: i32, %arg2: i32) -> (i32, i32) {
    %c0_i32 = arith.constant 0 : i32
    %c0_i32_0 = arith.constant 0 : i32
    %c0_i32_1 = arith.constant 0 : i32
    return %c0_i32, %c0_i32_0 : i32, i32
  }
  func.func @transform_4(%arg0: i32, %arg1: i32, %arg2: i32) -> (i32, i32) {
    %c0_i32 = arith.constant 0 : i32
    %c0_i32_0 = arith.constant 0 : i32
    %c0_i32_1 = arith.constant 0 : i32
    return %c0_i32, %c0_i32_0 : i32, i32
  }
  func.func @transform_5(%arg0: i32, %arg1: i32, %arg2: i32) -> (i32, i32, i32) {
    %c0_i32 = arith.constant 0 : i32
    %c0_i32_0 = arith.constant 0 : i32
    return %arg0, %arg1, %c0_i32 : i32, i32, i32
  }
  func.func @transform_6(%arg0: i32, %arg1: i32, %arg2: i32) -> (i32, i32, i32) {
    %c0_i32 = arith.constant 0 : i32
    %c0_i32_0 = arith.constant 0 : i32
    return %arg0, %arg1, %c0_i32 : i32, i32, i32
  }
}

</mosaic_0001>

<bundles_post_ra>
// kernel: tpu_custom_call.1
= control target key start
LH: loop header
LB: loop body
LE: loop exit
PB: predicated region body
PF: predicated region fallthrough
CT: control target
= control target key end

     0   :  { %s1680_s0 = inlined_call_operand.hbm [shape: f32[2,8,32], index: 0, kind: input, shape index: {}]   ;;  %s1681_s1 = inlined_call_operand.hbm [shape: f32[2,8,32], index: 1, kind: input, shape index: {}]   ;;  %s1682_s2 = inlined_call_operand.hbm [shape: f32[32,32], index: 2, kind: input, shape index: {}]   ;;  %s1683_s3 = inlined_call_operand.hbm [shape: f32[32,32], index: 3, kind: input, shape index: {}]   ;;  %s1684_s4 = inlined_call_operand.vmem [shape: f32[1,32], index: 4, kind: input, shape index: {}]   ;;  %s1685_s5 = inlined_call_operand.hbm [shape: f32[2,8,32], index: 5, kind: output, shape index: {0}]   ;;  %s1686_s6 = inlined_call_operand.hbm [shape: f32[2,8,8], index: 6, kind: output, shape index: {1}]  }
   0x1   :  { %1688 = sst [smem:[#allocation22_spill]] %s1680_s0 }
   0x2   :  { %1689 = sst [smem:[#allocation23_spill]] %s1681_s1 }
   0x3   :  { %1690 = sst [smem:[#allocation24_spill]] %s1682_s2 }
   0x4   :  { %1691 = sst [smem:[#allocation25_spill]] %s1683_s3 }
   0x5   :  { %12 = vsyncpa [#allocation6], 0 }
   0x6   :  { %14 = vsyncpa [#allocation6 + $0x1], 0 }
   0x7   :  { %15 = vsyncpa [#allocation9], 0 }
   0x8   :  { %17 = vsyncpa [#allocation9 + $0x1], 0 }
   0x9   :  { %18 = vsyncpa [#allocation12], 0 }
   0xa   :  { %19 = vsyncpa [#allocation7], 0 }
   0xb   :  { %21 = vsyncpa [#allocation7 + $0x1], 0 }
   0xc   :  { %22 = vsyncpa [#allocation15], 0 }
   0xd   :  { %24 = vsyncpa [#allocation15 + $0x1], 0  ;;  %s1411_s21 = smov 0   ;;  %s1413_s22 = smov 0  }
   0xe   :  { %s1415_s23 = smov 0   ;;  %s1417_s24 = smov 0  }
   0xf   :  { %s1419_s25 = smov 0   ;;  %s1421_s26 = smov 0  }
  0x10 LB: > { %s1442_s27 = sadd.s32 4294967295, %s1362_s26   ;;  %s947_s28 = sadd.s32 4294967294, %s1362_s26   ;;  %s1362_s26 = sphi %s1421_s26, %s30_s26   ;;  %s1358_s25 = sphi %s1419_s25, %s1713_s25   ;;  %s1354_s24 = sphi %s1417_s24, %s1712_s24   ;;  %s1350_s23 = sphi %s1415_s23, %s1711_s23   ;;  %s1346_s22 = sphi %s1413_s22, %s1710_s22   ;;  %s1342_s21 = sphi %s1411_s21, %s1709_s21  }
  0x11   : > { %p71_p0 = scmp.ne.s32.totalorder %s1346_s22, %s1342_s21  ;;  %p1687_p1 = scmp.eq.s32.totalorder %s1442_s27, 0 }
  0x12   : > { %p194_p3 = scmp.eq.s32.totalorder %s947_s28, 1  ;;  %p948_p5 = scmp.ge.s32.totalorder %s1362_s26, 1 }
  0x13   : > { %p1451_p4 = por %p1687_p1, %p71_p0  ;;  %p229_p7 = scmp.lt.s32.totalorder %s1362_s26, 3 }
  0x14   : > { %p1456_p6 = por %p194_p3, %p71_p0  ;;  %s1364_s8 = smov [#allocation10]  }
  0x15   : > { %p1461_p8 = pnand %p948_p5, %p229_p7  ;;  %s241_s9 = sshll.u32 %s1364_s8, 4  ;;  %s242_s9 = int_to_ptr.vmem [resolvable:$true] %s241_s9 }
  0x16   : > { %s1693_s30 = scalar_select %p1456_p6, 1, 0 }
  0x17   : > { %p1037_p9 = pneg %p1461_p8  ;;  %s1365_s11 = smov [#allocation11]  }
  0x18   : > { %s254_s12 = sshll.u32 %s1365_s11, 4  ;;  %s1143_s13 = scalar_lea.vmem %s242_s9, 512  ;;  %s255_s12 = int_to_ptr.vmem [resolvable:$true] %s254_s12 }
  0x19   : > { %p1470_p11 = pnand %p1037_p9, %p1687_p1  ;;  %p1144_p13 = scmp.ne.s32.totalorder %s242_s9, %s1143_s13 }
  0x1a   : > { %p1151_p5 = scmp.lt.s32.totalorder %s242_s9, %s242_s9  ;;  %p1152_p7 = scmp.lt.s32.totalorder %s1143_s13, %s1143_s13 }
  0x1b   : > { %p1134_p12 = pneg %p1470_p11 }
  0x1c   : > { %p1153_p10 = por %p1152_p7, %p1151_p5 }
  0x1d   : > { %p1146_p0 = pnand %p1144_p13, %p1134_p12 }
  0x1f   : > { %p1147_p3 = pneg %p1146_p0 }
  0x21   : > { %p1154_p9 = pnand %p1153_p10, %p1147_p3 }
  0x23   : > { %1157 = shalt.err (!%p1154_p9)
}
  0x24   : > { %s1366_s14 = smov 128   ;;  %s1367_s15 = smov 8  }
  0x25   : > { %s1696_s2 = sld [smem:[#allocation24_spill]]  ;;  %s1169_s18 = scalar_lea.vmem %s255_s12, 512 }
  0x26   : > { %p1170_p1 = scmp.ne.s32.totalorder %s255_s12, %s1169_s18  ;;  %p1177_p2 = scmp.lt.s32.totalorder %s255_s12, %s255_s12 }
  0x27   : > { %p1178_p6 = scmp.lt.s32.totalorder %s1169_s18, %s1169_s18 }
  0x28   : > { %p1172_p13 = pnand %p1170_p1, %p1134_p12 }
  0x29   : > { %p1179_p5 = por %p1178_p6, %p1177_p2 }
  0x2a   : > { %p1173_p0 = pneg %p1172_p13 }
  0x2b   : > { %1040 = dma.hbm_to_vmem [thread:$0]  (!%p1470_p11), %s1696_s2, 512, %s242_s9, [#allocation9], %s1366_s14, %s1366_s14, %s1367_s15  }
  0x2c   : > { %p1180_p10 = pnand %p1179_p5, %p1173_p0 }
  0x2e   : > { %1183 = shalt.err (!%p1180_p10)
}
  0x2f   : > { %s1697_s3 = sld [smem:[#allocation25_spill]]  ;;  %s49_s28 = sadd.s32 1, %s1358_s25 }
  0x30   : > { %s58_s8 = sadd.s32 1, %s1350_s23  ;;  %p51_p1 = scmp.ge.s32.totalorder %s49_s28, 2 }
  0x31   : > { %p65_p2 = scmp.ne.s32.totalorder %s1350_s23, %s1346_s22  ;;  %p66_p6 = scmp.eq.s32.totalorder %s1362_s26, 0 }
  0x32   : > { %p1060_p12 = scmp.lt.s32.totalorder %s1362_s26, 2  ;;  %s1715_s28 = smov (%p51_p1, %s49_s28), 0 }
  0x33   : > { %p67_p3 = por %p66_p6, %p65_p2  ;;  %p1698_p7 = scmp.eq.s32.totalorder %s1442_s27, 1 }
  0x34   : > { %s53_s10 = ssub.s32 %s1358_s25, %s1715_s28  ;;  %s271_s11 = sand.u32 1, %s1350_s23  }
  0x35   : > { %1043 = dma.hbm_to_vmem [thread:$0]  (!%p1470_p11), %s1697_s3, 512, %s255_s12, [#allocation12], %s1366_s14, %s1366_s14, %s1367_s15  }
  0x36   : > { %p1502_p9 = por %p1698_p7, %p65_p2  ;;  %p56_p13 = scmp.eq.s32.totalorder %s53_s10, 0 }
  0x37   : > { %s952_s12 = sshll.u32 %s271_s11, 3  ;;  %s953_s13 = sshll.u32 %s1358_s25, 7 }
  0x38   : > { %s1511_s14 = scalar_select %p56_p13, %s1350_s23, %s58_s8  }
  0x39   : > { %s1700_s0 = sld [smem:[#allocation22_spill]]  ;;  %s275_s18 = scalar_lea.vmem [#allocation5], %s952_s12 }
  0x3a   : > { %s283_s19 = sshll.u32 %s275_s18, 4  ;;  %p1518_p11 = pnand %p1060_p12, %p67_p3  ;;  %s284_s19 = int_to_ptr.vmem [resolvable:$true] %s283_s19 }
  0x3b   : > { %s1702_s1 = sld [smem:[#allocation23_spill]]  ;;  %s272_s8 = scalar_lea.sflag [#allocation6], %s271_s11 }
  0x3c   : > { %p1186_p0 = pneg %p1518_p11  ;;  %s1197_s15 = scalar_lea.vmem %s284_s19, 128 }
  0x3d   : > { %p1198_p5 = scmp.ne.s32.totalorder %s284_s19, %s1197_s15  ;;  %s1368_s16 = smov [#allocation5]  }
  0x3e   : > { %s1202_s18 = sshll.u32 %s1368_s16, 4  ;;  %s1203_s18 = int_to_ptr.vmem [resolvable:$false] %s1202_s18 }
  0x3f   : > { %s281_s17 = scalar_lea.hbm %s1700_s0, %s953_s13  ;;  %p1200_p10 = pnand %p1198_p5, %p1186_p0 }
  0x40   : > { %s1204_s0 = scalar_lea.vmem %s1203_s18, 256  ;;  %p1205_p2 = scmp.lt.s32.totalorder %s284_s19, %s1203_s18 }
  0x41   : > { %s1525_s3 = scalar_lea.hbm %s1702_s1, %s953_s13  ;;  %p1201_p1 = pneg %p1200_p10 }
  0x42   : > { %p1206_p6 = scmp.lt.s32.totalorder %s1204_s0, %s1197_s15 }
  0x44   : > { %p1207_p12 = por %p1206_p6, %p1205_p2 }
  0x46   : > { %p1208_p3 = pnand %p1207_p12, %p1201_p1 }
  0x48   : > { %1211 = shalt.err (!%p1208_p3)
}
  0x49   : > { %1047 = dma.hbm_to_vmem [thread:$0]  (!%p1518_p11), %s281_s17, 128, %s284_s19, %s272_s8  }
  0x4a   : > { %s290_s2 = sand.u32 1, %s1362_s26   ;;  %s294_s11 = scalar_lea.vmem [#allocation8], %s952_s12 }
  0x4b   : > { %s302_s13 = sshll.u32 %s294_s11, 4  ;;  %s291_s10 = scalar_lea.sflag [#allocation9], %s290_s2  ;;  %s303_s13 = int_to_ptr.vmem [resolvable:$true] %s302_s13 }
  0x4c   : > { %s1225_s1 = scalar_lea.vmem %s303_s13, 128  ;;  %s1369_s0 = smov [#allocation8]  }
  0x4d   : > { %p1226_p7 = scmp.ne.s32.totalorder %s303_s13, %s1225_s1  ;;  %s1230_s15 = sshll.u32 %s1369_s0, 4  ;;  %s1231_s15 = int_to_ptr.vmem [resolvable:$false] %s1230_s15 }
  0x4e   : > { %s1232_s16 = scalar_lea.vmem %s1231_s15, 256  ;;  %p1233_p10 = scmp.lt.s32.totalorder %s303_s13, %s1231_s15 }
  0x4f   : > { %p1228_p13 = pnand %p1226_p7, %p1186_p0  ;;  %p1234_p1 = scmp.lt.s32.totalorder %s1232_s16, %s1225_s1 }
  0x51   : > { %p1229_p5 = pneg %p1228_p13  ;;  %p1235_p2 = por %p1234_p1, %p1233_p10 }
  0x53   : > { %p1236_p6 = pnand %p1235_p2, %p1229_p5 }
  0x55   : > { %1239 = shalt.err (!%p1236_p6)
}
  0x56   : > { %1050 = dma.hbm_to_vmem [thread:$0]  (!%p1518_p11), %s1525_s3, 128, %s303_s13, %s291_s10  }
  0x57   : > { %311 = sbr.rel (%p1461_p8) target bundleno = 1097 (0x449), region = 40  ;;  %s1544_s12 = sand.u32 (!%p1461_p8), 1, %s1346_s22  }
  0x58   : > { %s1547_s17 = sshll.u32 (!%p1461_p8), %s1544_s12, 3  ;;  %s314_s1 = scalar_lea.sflag (!%p1461_p8), [#allocation6], %s1544_s12 }
  0x59   : > { %s317_s19 = scalar_lea.vmem (!%p1461_p8), [#allocation5], %s1547_s17 }
  0x5c   : > { %1317 = dma.done.wait (%p1451_p4), %s314_s1, 128  }
  0x5d   : > { %1319 = vsyncadd (%p1451_p4), %s314_s1, 4294967168  ;;  %s322_s3 = sand.u32 1, %s1442_s27   ;;  %s326_s20 = scalar_lea.vmem [#allocation8], %s1547_s17 }
  0x5e   : > { %s323_s7 = scalar_lea.sflag [#allocation9], %s322_s3 }
  0x5f   : > { %1321 = dma.done.wait (%p1451_p4), %s323_s7, 128  }
  0x60   : > { %1323 = vsyncadd (%p1451_p4), %s323_s7, 4294967168  ;;  %p1703_p8 = scmp.eq.s32.totalorder %s1442_s27, 0 }
  0x62   : > { %1325 = dma.done.wait (%p1703_p8), [#allocation9], 512   ;;  %p1704_p11 = pmov %p1703_p8 }
  0x63   : > { %p1705_p0 = pmov %p1703_p8 }
  0x64   : > { %1327 = vsyncadd (%p1704_p11), [#allocation9], 4294966784 }
  0x65   : > { %1329 = dma.done.wait (%p1705_p0), [#allocation12], 512   ;;  %p1706_p12 = pmov %p1705_p0 }
  0x66   : > { %vm380_vm0 = vcmask 261120   ;;  %v1370_v0 = vmov 0.0   ;;  %vm1371_vm1 = vmmov 0   ;;  %v383_v1 = vld [vmem:[%s326_s20] sm:$0xff]  ;;  %v382_v2 = vld [vmem:[%s317_s19] sm:$0xff]  ;;  %vm377_vm2 = vcmask 7168  }
  0x67   : > { %1331 = vsyncadd (%p1706_p12), [#allocation12], 4294966784  ;;  %989 = vmatprep.subr.mxu0 %v1370_v0  ;;  %381 = vst.msk [vmem:[#allocation4] sm:$0xff] %vm380_vm0, %v1370_v0  ;;  %991 = vmatprep.mubr.msk.f32.mxu0 %vm1371_vm1, %v1370_v0  ;;  %v1372_v3 = vmov -inf   ;;  %vm462_vm3 = vcmask 64512   ;;  %v1373_v7 = vmov 0  }
  0x68   : > { %994 = vmatprep.subr.mxu1 %v1370_v0  ;;  %996 = vmatprep.mubr.msk.f32.mxu1 %vm1371_vm1, %v1370_v0  ;;  %378 = vst.msk [vmem:[#allocation2] sm:$0xff] %vm377_vm2, %v1372_v3  ;;  %379 = vst.msk [vmem:[#allocation3] sm:$0xff] %vm377_vm2, %v1370_v0  ;;  %v599_v19 = vld [vmem:[#allocation11 + $0x18] sm:$0xff]  ;;  %v598_v20 = vld [vmem:[#allocation11 + $0x10] sm:$0xff]  ;;  %s372_s27 = scalar_lea.vmem [#allocation14], %s1547_s17  ;;  %s971_s29 = sshll.u32 %s1354_s24, 7 }
  0x69   : > { %990 = vmatpush3.xpose.msk.msra.mxu0 %vm380_vm0, %v383_v1  ;;  %995 = vmatpush3.msra.mxu1 %v383_v1  ;;  %v595_v21 = vld [vmem:[#allocation10 + $0x18] sm:$0xff]  ;;  %v594_v22 = vld [vmem:[#allocation10 + $0x10] sm:$0xff]  ;;  %v597_v23 = vld [vmem:[#allocation11 + $0x8] sm:$0xff]  ;;  %s785_s2 = scalar_lea.hbm %s1686_s6, %s971_s29  ;;  %s787_s11 = sshll.u32 %s372_s27, 4  ;;  %s788_s11 = int_to_ptr.vmem [resolvable:$true] %s787_s11 }
  0x6a   : > { %999 = vmatprep.subr.mxu1 %v1370_v0  ;;  %1010 = vmatprep.subr.mxu0 %v1370_v0  ;;  %v593_v24 = vld [vmem:[#allocation10 + $0x8] sm:$0xff]  ;;  %v596_v25 = vld [vmem:[#allocation11] sm:$0xff]  ;;  %s759_s13 = scalar_lea.sflag [#allocation15], %s1544_s12  ;;  %s1240_s10 = scalar_lea.vmem %s788_s11, 128 }
  0x6b   : > { %1120 = vset.pattern.permute.xlu0 %v1373_v7  ;;  %1121 = vset.pattern.permute.xlu1 %v1373_v7  ;;  %v592_v31 = vld [vmem:[#allocation10] sm:$0xff]  ;;  %p1241_p4 = scmp.ne.s32.totalorder %s788_s11, %s1240_s10  ;;  %s1374_s0 = smov [#allocation14]  }
  0x6c   : > { %992 = vmatmul.mubr.msk.f32.vlgmr.msra.gmra.mxu0 %vm380_vm0, %v382_v2  ;;  %s1244_s15 = sshll.u32 %s1374_s0, 4  ;;  %s1245_s15 = int_to_ptr.vmem [resolvable:$false] %s1244_s15 }
  0x6d   : > { %1018 = vmatprep.mubr.msk.f32.mxu0 %vm1371_vm1, %v1370_v0  ;;  %1011 = vmatpush3.msra.mxu0 %v595_v21  ;;  %p1242_p3 = pnand %p1241_p4, %p1502_p9  ;;  %s1246_s16 = scalar_lea.vmem %s1245_s15, 256 }
  0x6e   : > { %1012 = vmatprep.subr.mxu0 %v1370_v0  ;;  %v486_v34 = vld [vmem:[#allocation4] sm:$0xff]  ;;  %p1247_p13 = scmp.lt.s32.totalorder %s788_s11, %s1245_s15  ;;  %p1248_p5 = scmp.lt.s32.totalorder %s1246_s16, %s1240_s10 }
  0x6f   : > { %v461_v8 = vld [vmem:[#allocation2] sm:$0xff]  ;;  %1013 = vmatpush3.msra.mxu0 %v594_v22  ;;  %v478_v26 = vld [vmem:[#allocation3] sm:$0xff]  ;;  %p1243_p7 = pneg %p1242_p3 }
  0x70   : > { %1014 = vmatprep.subr.mxu0 %v1370_v0  ;;  %p1249_p10 = por %p1248_p5, %p1247_p13 }
  0x71   : > { %1015 = vmatpush3.msra.mxu0 %v593_v24 }
  0x72   : > { %1016 = vmatprep.subr.mxu0 %v1370_v0  ;;  %p1250_p1 = pnand %p1249_p10, %p1243_p7 }
  0x73   : > { %1017 = vmatpush3.msra.mxu0 %v592_v31 }
 0x12c   : > { %v1586_v4 = vpop.f32.mrf.mxu0 }
 0x12d   : > { %v463_v5 = vsel %vm462_vm3, %v1586_v4, -inf }
 0x12e   : > { %464 = vmax.xlane.f32.xlu0 %v463_v5  ;;  %v993_v6 = vpop.f32.mrf.mxu0 }
 0x1b7   : > { %v465_v9 = vpop.xlane.xlu0 %464 }
 0x1b8   : > { %v466_v10 = vmax.f32 %v461_v8, %v465_v9 }
 0x1ba   : > { %v467_v11 = vsub.f32 %v461_v8, %v466_v10  ;;  %568 = vst.msk [vmem:[#allocation2] sm:$0xff] %vm377_vm2, %v466_v10  ;;  %472 = vperm.xlu0 %1120, %v466_v10  }
 0x1bc   : > { %v468_v16 = vmul.f32 1.442695, %v467_v11 }
 0x1c1   : > { %v574_v33 = vld [vmem:[#allocation2] sm:$0xff] }
 0x235   : > { %v473_v12 = vpop.permute.xlu0 %472 }
 0x236   : > { %v475_v13 = vsub.f32 %v1586_v4, %v473_v12 }
 0x238   : > { %v476_v14 = vmul.f32 1.442695, %v475_v13 }
 0x23a   : > { %1122 = vpow2.f32 %v476_v14 }
 0x23b   : > { %1124 = vpow2.f32 %v468_v16 }
 0x247   : > { %v1123_v15 = vpop.eup %1122 }
 0x248   : > { %997 = vmatmul.mubr.msk.f32.vlgmr.msra.gmra.mxu1 %vm462_vm3, %v1123_v15  ;;  %v480_v17 = vsel %vm462_vm3, %v1123_v15, 0.0  ;;  %v1125_v18 = vpop.eup %1124 }
 0x249   : > { %481 = vadd.xlane.f32.xlu1 %v480_v17  ;;  %1007 = vmatprep.mubr.msk.f32.mxu1 %vm1371_vm1, %v1370_v0  ;;  %v479_v27 = vmul.f32 %v1125_v18, %v478_v26 }
 0x24a   : > { %1000 = vmatpush3.msra.mxu1 %v599_v19 }
 0x24b   : > { %1001 = vmatprep.subr.mxu1 %v1370_v0 }
 0x24c   : > { %1002 = vmatpush3.msra.mxu1 %v598_v20 }
 0x24d   : > { %1003 = vmatprep.subr.mxu1 %v1370_v0 }
 0x24e   : > { %1004 = vmatpush3.msra.mxu1 %v597_v23 }
 0x24f   : > { %1005 = vmatprep.subr.mxu1 %v1370_v0 }
 0x250   : > { %1006 = vmatpush3.msra.mxu1 %v596_v25 }
 0x251   : > { %1008 = vmatmul.mubr.msk.f32.vlgmr.msra.gmra.mxu1 %vm380_vm0, %v382_v2 }
 0x25a   : > { %489 = vperm.xlu1 %1121, %v1125_v18  }
 0x2d2   : > { %v482_v28 = vpop.xlane.xlu1 %481 }
 0x2d3   : > { %v483_v29 = vadd.f32 %v482_v28, %v479_v27 }
 0x2d5   : > { %485 = vst.msk [vmem:[#allocation3] sm:$0xff] %vm377_vm2, %v483_v29 }
 0x2d6   : > { %v490_v35 = vpop.permute.xlu1 %489 }
 0x2d7   : > { %v492_v36 = vmul.f32 %v490_v35, %v486_v34 }
 0x2dc   : > { %v572_v30 = vld [vmem:[#allocation3] sm:$0xff] }
 0x2dd   : > { %1126 = vrcp.f32 %v572_v30 }
 0x2ea   : > { %v1127_v32 = vpop.eup %1126 }
 0x2eb   : > { %585 = vperm.xlu1 %1121, %v1127_v32  }
 0x2ef   : > { %577 = vperm.xlu1 %1121, %v574_v33  }
 0x308   : > { %v562_v37 = vpop.f32.mrf.mxu1 }
 0x309   : > { %v566_v38 = vadd.f32 %v562_v37, %v492_v36 }
 0x30a   : > { %v998_v39 = vpop.f32.mrf.mxu1 }
 0x30b   : > { %567 = vst.msk [vmem:[#allocation4] sm:$0xff] %vm380_vm0, %v566_v38 }
 0x311   : > { %v666_v40 = vpop.f32.mrf.mxu1 }
 0x312   : > { %v590_v42 = vld [vmem:[#allocation4] sm:$0xff] }
 0x313   : > { %v1009_v41 = vpop.f32.mrf.mxu1 }
 0x366   : > { %v586_v43 = vpop.permute.xlu1 %585 }
 0x367   : > { %v591_v44 = vmul.f32 %v590_v42, %v586_v43 }
 0x369   : > { %1019 = vmatmul.mubr.msk.f32.vlgmr.msra.gmra.mxu0 %vm380_vm0, %v591_v44 }
 0x36a   : > { %v578_v45 = vpop.permute.xlu1 %577 }
 0x36b   : > { %v580_v46 = vsub.f32 %v1586_v4, %v578_v45 }
 0x36d   : > { %v581_v47 = vmul.f32 1.442695, %v580_v46 }
 0x36f   : > { %1128 = vpow2.f32 %v581_v47 }
 0x37c   : > { %v1129_v48 = vpop.eup %1128 }
 0x37d   : > { %v588_v49 = vmul.f32 %v1129_v48, %v586_v43 }
 0x37f   : > { %589 = vst.msk [vmem:[%s372_s27] sm:$0xff] %vm462_vm3, %v588_v49 }
 0x380   : > { %1253 = shalt.err (!%p1250_p1)
}
 0x381   : > { %s1254_s1 = scalar_lea.hbm %s785_s2, 128  ;;  %s1258_s7 = scalar_lea.hbm %s1686_s6, 256 }
 0x382   : > { %p1255_p2 = scmp.ne.s32.totalorder %s785_s2, %s1254_s1  ;;  %p1259_p11 = scmp.lt.s32.totalorder %s785_s2, %s1686_s6 }
 0x383   : > { %p1260_p0 = scmp.lt.s32.totalorder %s1258_s7, %s1254_s1 }
 0x384   : > { %p1256_p6 = pnand %p1255_p2, %p1502_p9 }
 0x385   : > { %p1261_p12 = por %p1260_p0, %p1259_p11 }
 0x386   : > { %p1257_p8 = pneg %p1256_p6 }
 0x388   : > { %p1262_p4 = pnand %p1261_p12, %p1257_p8 }
 0x38a   : > { %1265 = shalt.err (!%p1262_p4)
}
 0x38b   : > { %1034 = dma.vmem_to_hbm [thread:$0]  (%p1502_p9), %s788_s11, 128, %s785_s2, %s759_s13   ;;  %v968_v51 = vld [vmem:[%s1684_s4] ss:$0 sm:$0xff] }
 0x38c   : > { %s365_s10 = scalar_lea.vmem [#allocation13], %s1547_s17  ;;  %s1637_s1 = scalar_lea.hbm %s1685_s5, %s971_s29 }
 0x38d   : > { %s773_s0 = sshll.u32 %s365_s10, 4  ;;  %s754_s2 = scalar_lea.sflag [#allocation7], %s1544_s12  ;;  %s774_s0 = int_to_ptr.vmem [resolvable:$true] %s773_s0 }
 0x38e   : > { %s1266_s11 = scalar_lea.vmem %s774_s0, 128  ;;  %s1375_s13 = smov [#allocation13]  }
 0x38f   : > { %p1267_p3 = scmp.ne.s32.totalorder %s774_s0, %s1266_s11  ;;  %s1270_s19 = sshll.u32 %s1375_s13, 4  ;;  %s1271_s19 = int_to_ptr.vmem [resolvable:$false] %s1270_s19 }
 0x390   : > { %s1272_s17 = scalar_lea.vmem %s1271_s19, 256  ;;  %p1273_p5 = scmp.lt.s32.totalorder %s774_s0, %s1271_s19 }
 0x391   : > { %p1268_p7 = pnand %p1267_p3, %p1502_p9  ;;  %p1274_p10 = scmp.lt.s32.totalorder %s1272_s17, %s1266_s11 }
 0x393   : > { %p1269_p13 = pneg %p1268_p7  ;;  %p1275_p1 = por %p1274_p10, %p1273_p5 }
 0x395   : > { %p1276_p2 = pnand %p1275_p1, %p1269_p13 }
 0x429   : > { %v739_v50 = vpop.f32.mrf.mxu0 }
 0x42a   : > { %v740_v52 = vadd.f32 %v739_v50, %v666_v40 }
 0x42b   : > { %v1020_v53 = vpop.f32.mrf.mxu0 }
 0x42c   : > { %v750_v54 = vadd.f32 %v968_v51, %v740_v52 }
 0x42e   : > { %1130 = vtanh.f32 %v750_v54 }
 0x43b   : > { %v1131_v55 = vpop.eup %1130 }
 0x43c   : > { %752 = vst.msk [vmem:[%s365_s10] sm:$0xff] %vm380_vm0, %v1131_v55 }
 0x43d   : > { %1279 = shalt.err (!%p1276_p2)
}
 0x43e   : > { %s1280_s24 = scalar_lea.hbm %s1637_s1, 128  ;;  %s1284_s3 = scalar_lea.hbm %s1685_s5, 256 }
 0x43f   : > { %p1281_p6 = scmp.ne.s32.totalorder %s1637_s1, %s1280_s24  ;;  %p1285_p0 = scmp.lt.s32.totalorder %s1637_s1, %s1685_s5 }
 0x440   : > { %p1286_p12 = scmp.lt.s32.totalorder %s1284_s3, %s1280_s24 }
 0x441   : > { %p1282_p8 = pnand %p1281_p6, %p1502_p9 }
 0x442   : > { %p1287_p4 = por %p1286_p12, %p1285_p0 }
 0x443   : > { %p1283_p11 = pneg %p1282_p8 }
 0x445   : > { %p1288_p3 = pnand %p1287_p4, %p1283_p11 }
 0x447   : > { %1291 = shalt.err (!%p1288_p3)
}
 0x448   : > { %1033 = dma.vmem_to_hbm [thread:$0]  (%p1502_p9), %s774_s0, 128, %s1637_s1, %s754_s2  }
 0x449 PF: > { %s799_s27 = sand.u32 1, %s1342_s21   ;;  %p1707_p7 = scmp.ne.s32.totalorder %s1693_s30, 0 }
 0x44a   : > { %p1708_p13 = scmp.ge.s32.totalorder %s1362_s26, 2  ;;  %s800_s8 = scalar_lea.sflag [#allocation7], %s799_s27 }
 0x44c   : > { %p1052_p5 = pnand %p1708_p13, %p1707_p7 }
 0x44e   : > { %p1053_p10 = pneg %p1052_p5 }
 0x450   : > { %1333 = dma.done.wait (%p1053_p10), %s800_s8, 128  }
 0x451   : > { %1335 = vsyncadd (%p1053_p10), %s800_s8, 4294967168  ;;  %s809_s18 = scalar_lea.sflag [#allocation15], %s799_s27 }
 0x452   : > { %1337 = dma.done.wait (%p1053_p10), %s809_s18, 128  }
 0x453   : > { %1339 = vsyncadd (%p1053_p10), %s809_s18, 4294967168  ;;  %s30_s26 = sadd.s32 1, %s1362_s26   ;;  %s1709_s21 = smov %s1346_s22 }
 0x454   : > { %p27_p1 = scmp.ge.s32.totalorder %s30_s26, 4   ;;  %s1710_s22 = smov %s1350_s23 }
 0x455   : > { %s1711_s23 = smov %s1511_s14  ;;  %s1712_s24 = smov %s1358_s25 }
 0x456   : > { %s1713_s25 = smov %s1715_s28  ;;  %29 = sbr.rel (!%p27_p1) target bundleno = 16 (0x10), region = 131 }
 0x45b   :  { %814 = vsyncpa [#allocation6], 1 }
 0x45c   :  { %816 = vsyncpa [#allocation6 + $0x1], 1 }
 0x45d   :  { %817 = vsyncpa [#allocation9], 1 }
 0x45e   :  { %819 = vsyncpa [#allocation9 + $0x1], 1 }
 0x45f   :  { %820 = vsyncpa [#allocation12], 1 }
 0x460   :  { %821 = vsyncpa [#allocation7], 1 }
 0x461   :  { %823 = vsyncpa [#allocation7 + $0x1], 1 }
 0x462   :  { %824 = vsyncpa [#allocation15], 1 }
 0x463   :  { %826 = vsyncpa [#allocation15 + $0x1], 1 }

// kernel: tpu_custom_call.1
= control target key start
LH: loop header
LB: loop body
LE: loop exit
PB: predicated region body
PF: predicated region fallthrough
CT: control target
= control target key end

     0   :  { %s1680_s0 = inlined_call_operand.hbm [shape: f32[2,8,32], index: 0, kind: input, shape index: {}]   ;;  %s1681_s1 = inlined_call_operand.hbm [shape: f32[2,8,32], index: 1, kind: input, shape index: {}]   ;;  %s1682_s2 = inlined_call_operand.hbm [shape: f32[32,32], index: 2, kind: input, shape index: {}]   ;;  %s1683_s3 = inlined_call_operand.hbm [shape: f32[32,32], index: 3, kind: input, shape index: {}]   ;;  %s1684_s4 = inlined_call_operand.vmem [shape: f32[1,32], index: 4, kind: input, shape index: {}]   ;;  %s1685_s5 = inlined_call_operand.hbm [shape: f32[2,8,32], index: 5, kind: output, shape index: {0}]   ;;  %s1686_s6 = inlined_call_operand.hbm [shape: f32[2,8,8], index: 6, kind: output, shape index: {1}]  }
   0x1   :  { %1688 = sst [smem:[#allocation22_spill]] %s1680_s0 }
   0x2   :  { %1689 = sst [smem:[#allocation23_spill]] %s1681_s1 }
   0x3   :  { %1690 = sst [smem:[#allocation24_spill]] %s1682_s2 }
   0x4   :  { %1691 = sst [smem:[#allocation25_spill]] %s1683_s3 }
   0x5   :  { %12 = vsyncpa [#allocation6], 0 }
   0x6   :  { %14 = vsyncpa [#allocation6 + $0x1], 0 }
   0x7   :  { %15 = vsyncpa [#allocation9], 0 }
   0x8   :  { %17 = vsyncpa [#allocation9 + $0x1], 0 }
   0x9   :  { %18 = vsyncpa [#allocation12], 0 }
   0xa   :  { %19 = vsyncpa [#allocation7], 0 }
   0xb   :  { %21 = vsyncpa [#allocation7 + $0x1], 0 }
   0xc   :  { %22 = vsyncpa [#allocation15], 0 }
   0xd   :  { %24 = vsyncpa [#allocation15 + $0x1], 0  ;;  %s1411_s21 = smov 0   ;;  %s1413_s22 = smov 0  }
   0xe   :  { %s1415_s23 = smov 0   ;;  %s1417_s24 = smov 0  }
   0xf   :  { %s1419_s25 = smov 0   ;;  %s1421_s26 = smov 0  }
  0x10 LB: > { %s1442_s27 = sadd.s32 4294967295, %s1362_s26   ;;  %s947_s28 = sadd.s32 4294967294, %s1362_s26   ;;  %s1362_s26 = sphi %s1421_s26, %s30_s26   ;;  %s1358_s25 = sphi %s1419_s25, %s1713_s25   ;;  %s1354_s24 = sphi %s1417_s24, %s1712_s24   ;;  %s1350_s23 = sphi %s1415_s23, %s1711_s23   ;;  %s1346_s22 = sphi %s1413_s22, %s1710_s22   ;;  %s1342_s21 = sphi %s1411_s21, %s1709_s21  }
  0x11   : > { %p71_p0 = scmp.ne.s32.totalorder %s1346_s22, %s1342_s21  ;;  %p1687_p1 = scmp.eq.s32.totalorder %s1442_s27, 0 }
  0x12   : > { %p194_p3 = scmp.eq.s32.totalorder %s947_s28, 1  ;;  %p948_p5 = scmp.ge.s32.totalorder %s1362_s26, 1 }
  0x13   : > { %p1451_p4 = por %p1687_p1, %p71_p0  ;;  %p229_p7 = scmp.lt.s32.totalorder %s1362_s26, 3 }
  0x14   : > { %p1456_p6 = por %p194_p3, %p71_p0  ;;  %s1364_s8 = smov [#allocation10]  }
  0x15   : > { %p1461_p8 = pnand %p948_p5, %p229_p7  ;;  %s241_s9 = sshll.u32 %s1364_s8, 4  ;;  %s242_s9 = int_to_ptr.vmem [resolvable:$true] %s241_s9 }
  0x16   : > { %s1693_s30 = scalar_select %p1456_p6, 1, 0 }
  0x17   : > { %p1037_p9 = pneg %p1461_p8  ;;  %s1365_s11 = smov [#allocation11]  }
  0x18   : > { %s254_s12 = sshll.u32 %s1365_s11, 4  ;;  %s1143_s13 = scalar_lea.vmem %s242_s9, 512  ;;  %s255_s12 = int_to_ptr.vmem [resolvable:$true] %s254_s12 }
  0x19   : > { %p1470_p11 = pnand %p1037_p9, %p1687_p1  ;;  %p1144_p13 = scmp.ne.s32.totalorder %s242_s9, %s1143_s13 }
  0x1a   : > { %p1151_p5 = scmp.lt.s32.totalorder %s242_s9, %s242_s9  ;;  %p1152_p7 = scmp.lt.s32.totalorder %s1143_s13, %s1143_s13 }
  0x1b   : > { %p1134_p12 = pneg %p1470_p11 }
  0x1c   : > { %p1153_p10 = por %p1152_p7, %p1151_p5 }
  0x1d   : > { %p1146_p0 = pnand %p1144_p13, %p1134_p12 }
  0x1f   : > { %p1147_p3 = pneg %p1146_p0 }
  0x21   : > { %p1154_p9 = pnand %p1153_p10, %p1147_p3 }
  0x23   : > { %1157 = shalt.err (!%p1154_p9)
}
  0x24   : > { %s1366_s14 = smov 128   ;;  %s1367_s15 = smov 8  }
  0x25   : > { %s1696_s2 = sld [smem:[#allocation24_spill]]  ;;  %s1169_s18 = scalar_lea.vmem %s255_s12, 512 }
  0x26   : > { %p1170_p1 = scmp.ne.s32.totalorder %s255_s12, %s1169_s18  ;;  %p1177_p2 = scmp.lt.s32.totalorder %s255_s12, %s255_s12 }
  0x27   : > { %p1178_p6 = scmp.lt.s32.totalorder %s1169_s18, %s1169_s18 }
  0x28   : > { %p1172_p13 = pnand %p1170_p1, %p1134_p12 }
  0x29   : > { %p1179_p5 = por %p1178_p6, %p1177_p2 }
  0x2a   : > { %p1173_p0 = pneg %p1172_p13 }
  0x2b   : > { %1040 = dma.hbm_to_vmem [thread:$0]  (!%p1470_p11), %s1696_s2, 512, %s242_s9, [#allocation9], %s1366_s14, %s1366_s14, %s1367_s15  }
  0x2c   : > { %p1180_p10 = pnand %p1179_p5, %p1173_p0 }
  0x2e   : > { %1183 = shalt.err (!%p1180_p10)
}
  0x2f   : > { %s1697_s3 = sld [smem:[#allocation25_spill]]  ;;  %s49_s28 = sadd.s32 1, %s1358_s25 }
  0x30   : > { %s58_s8 = sadd.s32 1, %s1350_s23  ;;  %p51_p1 = scmp.ge.s32.totalorder %s49_s28, 2 }
  0x31   : > { %p65_p2 = scmp.ne.s32.totalorder %s1350_s23, %s1346_s22  ;;  %p66_p6 = scmp.eq.s32.totalorder %s1362_s26, 0 }
  0x32   : > { %p1060_p12 = scmp.lt.s32.totalorder %s1362_s26, 2  ;;  %s1715_s28 = smov (%p51_p1, %s49_s28), 0 }
  0x33   : > { %p67_p3 = por %p66_p6, %p65_p2  ;;  %p1698_p7 = scmp.eq.s32.totalorder %s1442_s27, 1 }
  0x34   : > { %s53_s10 = ssub.s32 %s1358_s25, %s1715_s28  ;;  %s271_s11 = sand.u32 1, %s1350_s23  }
  0x35   : > { %1043 = dma.hbm_to_vmem [thread:$0]  (!%p1470_p11), %s1697_s3, 512, %s255_s12, [#allocation12], %s1366_s14, %s1366_s14, %s1367_s15  }
  0x36   : > { %p1502_p9 = por %p1698_p7, %p65_p2  ;;  %p56_p13 = scmp.eq.s32.totalorder %s53_s10, 0 }
  0x37   : > { %s952_s12 = sshll.u32 %s271_s11, 3  ;;  %s953_s13 = sshll.u32 %s1358_s25, 7 }
  0x38   : > { %s1511_s14 = scalar_select %p56_p13, %s1350_s23, %s58_s8  }
  0x39   : > { %s1700_s0 = sld [smem:[#allocation22_spill]]  ;;  %s275_s18 = scalar_lea.vmem [#allocation5], %s952_s12 }
  0x3a   : > { %s283_s19 = sshll.u32 %s275_s18, 4  ;;  %p1518_p11 = pnand %p1060_p12, %p67_p3  ;;  %s284_s19 = int_to_ptr.vmem [resolvable:$true] %s283_s19 }
  0x3b   : > { %s1702_s1 = sld [smem:[#allocation23_spill]]  ;;  %s272_s8 = scalar_lea.sflag [#allocation6], %s271_s11 }
  0x3c   : > { %p1186_p0 = pneg %p1518_p11  ;;  %s1197_s15 = scalar_lea.vmem %s284_s19, 128 }
  0x3d   : > { %p1198_p5 = scmp.ne.s32.totalorder %s284_s19, %s1197_s15  ;;  %s1368_s16 = smov [#allocation5]  }
  0x3e   : > { %s1202_s18 = sshll.u32 %s1368_s16, 4  ;;  %s1203_s18 = int_to_ptr.vmem [resolvable:$false] %s1202_s18 }
  0x3f   : > { %s281_s17 = scalar_lea.hbm %s1700_s0, %s953_s13  ;;  %p1200_p10 = pnand %p1198_p5, %p1186_p0 }
  0x40   : > { %s1204_s0 = scalar_lea.vmem %s1203_s18, 256  ;;  %p1205_p2 = scmp.lt.s32.totalorder %s284_s19, %s1203_s18 }
  0x41   : > { %s1525_s3 = scalar_lea.hbm %s1702_s1, %s953_s13  ;;  %p1201_p1 = pneg %p1200_p10 }
  0x42   : > { %p1206_p6 = scmp.lt.s32.totalorder %s1204_s0, %s1197_s15 }
  0x44   : > { %p1207_p12 = por %p1206_p6, %p1205_p2 }
  0x46   : > { %p1208_p3 = pnand %p1207_p12, %p1201_p1 }
  0x48   : > { %1211 = shalt.err (!%p1208_p3)
}
  0x49   : > { %1047 = dma.hbm_to_vmem [thread:$0]  (!%p1518_p11), %s281_s17, 128, %s284_s19, %s272_s8  }
  0x4a   : > { %s290_s2 = sand.u32 1, %s1362_s26   ;;  %s294_s11 = scalar_lea.vmem [#allocation8], %s952_s12 }
  0x4b   : > { %s302_s13 = sshll.u32 %s294_s11, 4  ;;  %s291_s10 = scalar_lea.sflag [#allocation9], %s290_s2  ;;  %s303_s13 = int_to_ptr.vmem [resolvable:$true] %s302_s13 }
  0x4c   : > { %s1225_s1 = scalar_lea.vmem %s303_s13, 128  ;;  %s1369_s0 = smov [#allocation8]  }
  0x4d   : > { %p1226_p7 = scmp.ne.s32.totalorder %s303_s13, %s1225_s1  ;;  %s1230_s15 = sshll.u32 %s1369_s0, 4  ;;  %s1231_s15 = int_to_ptr.vmem [resolvable:$false] %s1230_s15 }
  0x4e   : > { %s1232_s16 = scalar_lea.vmem %s1231_s15, 256  ;;  %p1233_p10 = scmp.lt.s32.totalorder %s303_s13, %s1231_s15 }
  0x4f   : > { %p1228_p13 = pnand %p1226_p7, %p1186_p0  ;;  %p1234_p1 = scmp.lt.s32.totalorder %s1232_s16, %s1225_s1 }
  0x51   : > { %p1229_p5 = pneg %p1228_p13  ;;  %p1235_p2 = por %p1234_p1, %p1233_p10 }
  0x53   : > { %p1236_p6 = pnand %p1235_p2, %p1229_p5 }
  0x55   : > { %1239 = shalt.err (!%p1236_p6)
}
  0x56   : > { %1050 = dma.hbm_to_vmem [thread:$0]  (!%p1518_p11), %s1525_s3, 128, %s303_s13, %s291_s10  }
  0x57   : > { %311 = sbr.rel (%p1461_p8) target bundleno = 1097 (0x449), region = 40  ;;  %s1544_s12 = sand.u32 (!%p1461_p8), 1, %s1346_s22  }
  0x58   : > { %s1547_s17 = sshll.u32 (!%p1461_p8), %s1544_s12, 3  ;;  %s314_s1 = scalar_lea.sflag (!%p1461_p8), [#allocation6], %s1544_s12 }
  0x59   : > { %s317_s19 = scalar_lea.vmem (!%p1461_p8), [#allocation5], %s1547_s17 }
  0x5c   : > { %1317 = dma.done.wait (%p1451_p4), %s314_s1, 128  }
  0x5d   : > { %1319 = vsyncadd (%p1451_p4), %s314_s1, 4294967168  ;;  %s322_s3 = sand.u32 1, %s1442_s27   ;;  %s326_s20 = scalar_lea.vmem [#allocation8], %s1547_s17 }
  0x5e   : > { %s323_s7 = scalar_lea.sflag [#allocation9], %s322_s3 }
  0x5f   : > { %1321 = dma.done.wait (%p1451_p4), %s323_s7, 128  }
  0x60   : > { %1323 = vsyncadd (%p1451_p4), %s323_s7, 4294967168  ;;  %p1703_p8 = scmp.eq.s32.totalorder %s1442_s27, 0 }
  0x62   : > { %1325 = dma.done.wait (%p1703_p8), [#allocation9], 512   ;;  %p1704_p11 = pmov %p1703_p8 }
  0x63   : > { %p1705_p0 = pmov %p1703_p8 }
  0x64   : > { %1327 = vsyncadd (%p1704_p11), [#allocation9], 4294966784 }
  0x65   : > { %1329 = dma.done.wait (%p1705_p0), [#allocation12], 512   ;;  %p1706_p12 = pmov %p1705_p0 }
  0x66   : > { %vm380_vm0 = vcmask 261120   ;;  %v1370_v0 = vmov 0.0   ;;  %vm1371_vm1 = vmmov 0   ;;  %v383_v1 = vld [vmem:[%s326_s20] sm:$0xff]  ;;  %v382_v2 = vld [vmem:[%s317_s19] sm:$0xff]  ;;  %vm377_vm2 = vcmask 7168  }
  0x67   : > { %1331 = vsyncadd (%p1706_p12), [#allocation12], 4294966784  ;;  %989 = vmatprep.subr.mxu0 %v1370_v0  ;;  %381 = vst.msk [vmem:[#allocation4] sm:$0xff] %vm380_vm0, %v1370_v0  ;;  %991 = vmatprep.mubr.msk.f32.mxu0 %vm1371_vm1, %v1370_v0  ;;  %v1372_v3 = vmov -inf   ;;  %vm462_vm3 = vcmask 64512   ;;  %v1373_v7 = vmov 0  }
  0x68   : > { %994 = vmatprep.subr.mxu1 %v1370_v0  ;;  %996 = vmatprep.mubr.msk.f32.mxu1 %vm1371_vm1, %v1370_v0  ;;  %378 = vst.msk [vmem:[#allocation2] sm:$0xff] %vm377_vm2, %v1372_v3  ;;  %379 = vst.msk [vmem:[#allocation3] sm:$0xff] %vm377_vm2, %v1370_v0  ;;  %v599_v19 = vld [vmem:[#allocation11 + $0x18] sm:$0xff]  ;;  %v598_v20 = vld [vmem:[#allocation11 + $0x10] sm:$0xff]  ;;  %s372_s27 = scalar_lea.vmem [#allocation14], %s1547_s17  ;;  %s971_s29 = sshll.u32 %s1354_s24, 7 }
  0x69   : > { %990 = vmatpush3.xpose.msk.msra.mxu0 %vm380_vm0, %v383_v1  ;;  %995 = vmatpush3.msra.mxu1 %v383_v1  ;;  %v595_v21 = vld [vmem:[#allocation10 + $0x18] sm:$0xff]  ;;  %v594_v22 = vld [vmem:[#allocation10 + $0x10] sm:$0xff]  ;;  %v597_v23 = vld [vmem:[#allocation11 + $0x8] sm:$0xff]  ;;  %s785_s2 = scalar_lea.hbm %s1686_s6, %s971_s29  ;;  %s787_s11 = sshll.u32 %s372_s27, 4  ;;  %s788_s11 = int_to_ptr.vmem [resolvable:$true] %s787_s11 }
  0x6a   : > { %999 = vmatprep.subr.mxu1 %v1370_v0  ;;  %1010 = vmatprep.subr.mxu0 %v1370_v0  ;;  %v593_v24 = vld [vmem:[#allocation10 + $0x8] sm:$0xff]  ;;  %v596_v25 = vld [vmem:[#allocation11] sm:$0xff]  ;;  %s759_s13 = scalar_lea.sflag [#allocation15], %s1544_s12  ;;  %s1240_s10 = scalar_lea.vmem %s788_s11, 128 }
  0x6b   : > { %1120 = vset.pattern.permute.xlu0 %v1373_v7  ;;  %1121 = vset.pattern.permute.xlu1 %v1373_v7  ;;  %v592_v31 = vld [vmem:[#allocation10] sm:$0xff]  ;;  %p1241_p4 = scmp.ne.s32.totalorder %s788_s11, %s1240_s10  ;;  %s1374_s0 = smov [#allocation14]  }
  0x6c   : > { %992 = vmatmul.mubr.msk.f32.vlgmr.msra.gmra.mxu0 %vm380_vm0, %v382_v2  ;;  %s1244_s15 = sshll.u32 %s1374_s0, 4  ;;  %s1245_s15 = int_to_ptr.vmem [resolvable:$false] %s1244_s15 }
  0x6d   : > { %1018 = vmatprep.mubr.msk.f32.mxu0 %vm1371_vm1, %v1370_v0  ;;  %1011 = vmatpush3.msra.mxu0 %v595_v21  ;;  %p1242_p3 = pnand %p1241_p4, %p1502_p9  ;;  %s1246_s16 = scalar_lea.vmem %s1245_s15, 256 }
  0x6e   : > { %1012 = vmatprep.subr.mxu0 %v1370_v0  ;;  %v486_v34 = vld [vmem:[#allocation4] sm:$0xff]  ;;  %p1247_p13 = scmp.lt.s32.totalorder %s788_s11, %s1245_s15  ;;  %p1248_p5 = scmp.lt.s32.totalorder %s1246_s16, %s1240_s10 }
  0x6f   : > { %v461_v8 = vld [vmem:[#allocation2] sm:$0xff]  ;;  %1013 = vmatpush3.msra.mxu0 %v594_v22  ;;  %v478_v26 = vld [vmem:[#allocation3] sm:$0xff]  ;;  %p1243_p7 = pneg %p1242_p3 }
  0x70   : > { %1014 = vmatprep.subr.mxu0 %v1370_v0  ;;  %p1249_p10 = por %p1248_p5, %p1247_p13 }
  0x71   : > { %1015 = vmatpush3.msra.mxu0 %v593_v24 }
  0x72   : > { %1016 = vmatprep.subr.mxu0 %v1370_v0  ;;  %p1250_p1 = pnand %p1249_p10, %p1243_p7 }
  0x73   : > { %1017 = vmatpush3.msra.mxu0 %v592_v31 }
 0x12c   : > { %v1586_v4 = vpop.f32.mrf.mxu0 }
 0x12d   : > { %v463_v5 = vsel %vm462_vm3, %v1586_v4, -inf }
 0x12e   : > { %464 = vmax.xlane.f32.xlu0 %v463_v5  ;;  %v993_v6 = vpop.f32.mrf.mxu0 }
 0x1b7   : > { %v465_v9 = vpop.xlane.xlu0 %464 }
 0x1b8   : > { %v466_v10 = vmax.f32 %v461_v8, %v465_v9 }
 0x1ba   : > { %v467_v11 = vsub.f32 %v461_v8, %v466_v10  ;;  %568 = vst.msk [vmem:[#allocation2] sm:$0xff] %vm377_vm2, %v466_v10  ;;  %472 = vperm.xlu0 %1120, %v466_v10  }
 0x1bc   : > { %v468_v16 = vmul.f32 1.442695, %v467_v11 }
 0x1c1   : > { %v574_v33 = vld [vmem:[#allocation2] sm:$0xff] }
 0x235   : > { %v473_v12 = vpop.permute.xlu0 %472 }
 0x236   : > { %v475_v13 = vsub.f32 %v1586_v4, %v473_v12 }
 0x238   : > { %v476_v14 = vmul.f32 1.442695, %v475_v13 }
 0x23a   : > { %1122 = vpow2.f32 %v476_v14 }
 0x23b   : > { %1124 = vpow2.f32 %v468_v16 }
 0x247   : > { %v1123_v15 = vpop.eup %1122 }
 0x248   : > { %997 = vmatmul.mubr.msk.f32.vlgmr.msra.gmra.mxu1 %vm462_vm3, %v1123_v15  ;;  %v480_v17 = vsel %vm462_vm3, %v1123_v15, 0.0  ;;  %v1125_v18 = vpop.eup %1124 }
 0x249   : > { %481 = vadd.xlane.f32.xlu1 %v480_v17  ;;  %1007 = vmatprep.mubr.msk.f32.mxu1 %vm1371_vm1, %v1370_v0  ;;  %v479_v27 = vmul.f32 %v1125_v18, %v478_v26 }
 0x24a   : > { %1000 = vmatpush3.msra.mxu1 %v599_v19 }
 0x24b   : > { %1001 = vmatprep.subr.mxu1 %v1370_v0 }
 0x24c   : > { %1002 = vmatpush3.msra.mxu1 %v598_v20 }
 0x24d   : > { %1003 = vmatprep.subr.mxu1 %v1370_v0 }
 0x24e   : > { %1004 = vmatpush3.msra.mxu1 %v597_v23 }
 0x24f   : > { %1005 = vmatprep.subr.mxu1 %v1370_v0 }
 0x250   : > { %1006 = vmatpush3.msra.mxu1 %v596_v25 }
 0x251   : > { %1008 = vmatmul.mubr.msk.f32.vlgmr.msra.gmra.mxu1 %vm380_vm0, %v382_v2 }
 0x25a   : > { %489 = vperm.xlu1 %1121, %v1125_v18  }
 0x2d2   : > { %v482_v28 = vpop.xlane.xlu1 %481 }
 0x2d3   : > { %v483_v29 = vadd.f32 %v482_v28, %v479_v27 }
 0x2d5   : > { %485 = vst.msk [vmem:[#allocation3] sm:$0xff] %vm377_vm2, %v483_v29 }
 0x2d6   : > { %v490_v35 = vpop.permute.xlu1 %489 }
 0x2d7   : > { %v492_v36 = vmul.f32 %v490_v35, %v486_v34 }
 0x2dc   : > { %v572_v30 = vld [vmem:[#allocation3] sm:$0xff] }
 0x2dd   : > { %1126 = vrcp.f32 %v572_v30 }
 0x2ea   : > { %v1127_v32 = vpop.eup %1126 }
 0x2eb   : > { %585 = vperm.xlu1 %1121, %v1127_v32  }
 0x2ef   : > { %577 = vperm.xlu1 %1121, %v574_v33  }
 0x308   : > { %v562_v37 = vpop.f32.mrf.mxu1 }
 0x309   : > { %v566_v38 = vadd.f32 %v562_v37, %v492_v36 }
 0x30a   : > { %v998_v39 = vpop.f32.mrf.mxu1 }
 0x30b   : > { %567 = vst.msk [vmem:[#allocation4] sm:$0xff] %vm380_vm0, %v566_v38 }
 0x311   : > { %v666_v40 = vpop.f32.mrf.mxu1 }
 0x312   : > { %v590_v42 = vld [vmem:[#allocation4] sm:$0xff] }
 0x313   : > { %v1009_v41 = vpop.f32.mrf.mxu1 }
 0x366   : > { %v586_v43 = vpop.permute.xlu1 %585 }
 0x367   : > { %v591_v44 = vmul.f32 %v590_v42, %v586_v43 }
 0x369   : > { %1019 = vmatmul.mubr.msk.f32.vlgmr.msra.gmra.mxu0 %vm380_vm0, %v591_v44 }
 0x36a   : > { %v578_v45 = vpop.permute.xlu1 %577 }
 0x36b   : > { %v580_v46 = vsub.f32 %v1586_v4, %v578_v45 }
 0x36d   : > { %v581_v47 = vmul.f32 1.442695, %v580_v46 }
 0x36f   : > { %1128 = vpow2.f32 %v581_v47 }
 0x37c   : > { %v1129_v48 = vpop.eup %1128 }
 0x37d   : > { %v588_v49 = vmul.f32 %v1129_v48, %v586_v43 }
 0x37f   : > { %589 = vst.msk [vmem:[%s372_s27] sm:$0xff] %vm462_vm3, %v588_v49 }
 0x380   : > { %1253 = shalt.err (!%p1250_p1)
}
 0x381   : > { %s1254_s1 = scalar_lea.hbm %s785_s2, 128  ;;  %s1258_s7 = scalar_lea.hbm %s1686_s6, 256 }
 0x382   : > { %p1255_p2 = scmp.ne.s32.totalorder %s785_s2, %s1254_s1  ;;  %p1259_p11 = scmp.lt.s32.totalorder %s785_s2, %s1686_s6 }
 0x383   : > { %p1260_p0 = scmp.lt.s32.totalorder %s1258_s7, %s1254_s1 }
 0x384   : > { %p1256_p6 = pnand %p1255_p2, %p1502_p9 }
 0x385   : > { %p1261_p12 = por %p1260_p0, %p1259_p11 }
 0x386   : > { %p1257_p8 = pneg %p1256_p6 }
 0x388   : > { %p1262_p4 = pnand %p1261_p12, %p1257_p8 }
 0x38a   : > { %1265 = shalt.err (!%p1262_p4)
}
 0x38b   : > { %1034 = dma.vmem_to_hbm [thread:$0]  (%p1502_p9), %s788_s11, 128, %s785_s2, %s759_s13   ;;  %v968_v51 = vld [vmem:[%s1684_s4] ss:$0 sm:$0xff] }
 0x38c   : > { %s365_s10 = scalar_lea.vmem [#allocation13], %s1547_s17  ;;  %s1637_s1 = scalar_lea.hbm %s1685_s5, %s971_s29 }
 0x38d   : > { %s773_s0 = sshll.u32 %s365_s10, 4  ;;  %s754_s2 = scalar_lea.sflag [#allocation7], %s1544_s12  ;;  %s774_s0 = int_to_ptr.vmem [resolvable:$true] %s773_s0 }
 0x38e   : > { %s1266_s11 = scalar_lea.vmem %s774_s0, 128  ;;  %s1375_s13 = smov [#allocation13]  }
 0x38f   : > { %p1267_p3 = scmp.ne.s32.totalorder %s774_s0, %s1266_s11  ;;  %s1270_s19 = sshll.u32 %s1375_s13, 4  ;;  %s1271_s19 = int_to_ptr.vmem [resolvable:$false] %s1270_s19 }
 0x390   : > { %s1272_s17 = scalar_lea.vmem %s1271_s19, 256  ;;  %p1273_p5 = scmp.lt.s32.totalorder %s774_s0, %s1271_s19 }
 0x391   : > { %p1268_p7 = pnand %p1267_p3, %p1502_p9  ;;  %p1274_p10 = scmp.lt.s32.totalorder %s1272_s17, %s1266_s11 }
 0x393   : > { %p1269_p13 = pneg %p1268_p7  ;;  %p1275_p1 = por %p1274_p10, %p1273_p5 }
 0x395   : > { %p1276_p2 = pnand %p1275_p1, %p1269_p13 }
 0x429   : > { %v739_v50 = vpop.f32.mrf.mxu0 }
 0x42a   : > { %v740_v52 = vadd.f32 %v739_v50, %v666_v40 }
 0x42b   : > { %v1020_v53 = vpop.f32.mrf.mxu0 }
 0x42c   : > { %v750_v54 = vadd.f32 %v968_v51, %v740_v52 }
 0x42e   : > { %1130 = vtanh.f32 %v750_v54 }
 0x43b   : > { %v1131_v55 = vpop.eup %1130 }
 0x43c   : > { %752 = vst.msk [vmem:[%s365_s10] sm:$0xff] %vm380_vm0, %v1131_v55 }
 0x43d   : > { %1279 = shalt.err (!%p1276_p2)
}
 0x43e   : > { %s1280_s24 = scalar_lea.hbm %s1637_s1, 128  ;;  %s1284_s3 = scalar_lea.hbm %s1685_s5, 256 }
 0x43f   : > { %p1281_p6 = scmp.ne.s32.totalorder %s1637_s1, %s1280_s24  ;;  %p1285_p0 = scmp.lt.s32.totalorder %s1637_s1, %s1685_s5 }
 0x440   : > { %p1286_p12 = scmp.lt.s32.totalorder %s1284_s3, %s1280_s24 }
 0x441   : > { %p1282_p8 = pnand %p1281_p6, %p1502_p9 }
 0x442   : > { %p1287_p4 = por %p1286_p12, %p1285_p0 }
 0x443   : > { %p1283_p11 = pneg %p1282_p8 }
 0x445   : > { %p1288_p3 = pnand %p1287_p4, %p1283_p11 }
 0x447   : > { %1291 = shalt.err (!%p1288_p3)
}
 0x448   : > { %1033 = dma.vmem_to_hbm [thread:$0]  (%p1502_p9), %s774_s0, 128, %s1637_s1, %s754_s2  }
 0x449 PF: > { %s799_s27 = sand.u32 1, %s1342_s21   ;;  %p1707_p7 = scmp.ne.s32.totalorder %s1693_s30, 0 }
 0x44a   : > { %p1708_p13 = scmp.ge.s32.totalorder %s1362_s26, 2  ;;  %s800_s8 = scalar_lea.sflag [#allocation7], %s799_s27 }
 0x44c   : > { %p1052_p5 = pnand %p1708_p13, %p1707_p7 }
 0x44e   : > { %p1053_p10 = pneg %p1052_p5 }
 0x450   : > { %1333 = dma.done.wait (%p1053_p10), %s800_s8, 128  }
 0x451   : > { %1335 = vsyncadd (%p1053_p10), %s800_s8, 4294967168  ;;  %s809_s18 = scalar_lea.sflag [#allocation15], %s799_s27 }
 0x452   : > { %1337 = dma.done.wait (%p1053_p10), %s809_s18, 128  }
 0x453   : > { %1339 = vsyncadd (%p1053_p10), %s809_s18, 4294967168  ;;  %s30_s26 = sadd.s32 1, %s1362_s26   ;;  %s1709_s21 = smov %s1346_s22 }
 0x454   : > { %p27_p1 = scmp.ge.s32.totalorder %s30_s26, 4   ;;  %s1710_s22 = smov %s1350_s23 }
 0x455   : > { %s1711_s23 = smov %s1511_s14  ;;  %s1712_s24 = smov %s1358_s25 }
 0x456   : > { %s1713_s25 = smov %s1715_s28  ;;  %29 = sbr.rel (!%p27_p1) target bundleno = 16 (0x10), region = 131 }
 0x45b   :  { %814 = vsyncpa [#allocation6], 1 }
 0x45c   :  { %816 = vsyncpa [#allocation6 + $0x1], 1 }
 0x45d   :  { %817 = vsyncpa [#allocation9], 1 }
 0x45e   :  { %819 = vsyncpa [#allocation9 + $0x1], 1 }
 0x45f   :  { %820 = vsyncpa [#allocation12], 1 }
 0x460   :  { %821 = vsyncpa [#allocation7], 1 }
 0x461   :  { %823 = vsyncpa [#allocation7 + $0x1], 1 }
 0x462   :  { %824 = vsyncpa [#allocation15], 1 }
 0x463   :  { %826 = vsyncpa [#allocation15 + $0x1], 1 }

</bundles_post_ra>
